<compile_context>
chip_gen: v6e
topology: v6e:2x2x1
jax: 0.10.0
libtpu: 0.0.40
codegen_flags: <defaults>
</compile_context>

<pallas_src>
import functools

import jax
import jax.numpy as jnp
from jax.experimental import pallas as pl
from jax.experimental.pallas import tpu as pltpu


_TM = 256                      # row tile for token-major matmuls
_TN = 512                      # output-column tile
_TH = 512                      # hidden tile for the fused MLP
_VMEM_LIMIT = 48 * 1024 * 1024


def _cparams(sem):
    return pltpu.CompilerParams(dimension_semantics=sem,
                                vmem_limit_bytes=_VMEM_LIMIT)


def _row_tile(m):
    return m if m <= _TM else _TM


def _col_tile(n):
    return n if n <= _TN else _TN


def _apply_act(y, act):
    if act == "none":
        return y
    if act == "relu":
        return jnp.maximum(y, 0.0)
    if act == "leaky_relu":               # nn.LeakyReLU default negative_slope = 0.01
        return jnp.where(y >= 0.0, y, 0.01 * y)
    if act == "quick_gelu":               # OpenAI CLIP QuickGELU
        return y * jax.nn.sigmoid(1.702 * y)
    if act == "sigmoid":
        return jax.nn.sigmoid(y)
    raise ValueError(act)


def _layernorm_f32(x, g, b, eps):
    mu = jnp.mean(x, axis=-1, keepdims=True)
    xc = x - mu
    var = jnp.mean(xc * xc, axis=-1, keepdims=True)
    return xc * jax.lax.rsqrt(var + eps) * g + b


# ----------------------------------------------------------------------------
# Pallas kernels
# ----------------------------------------------------------------------------
def _linear_kernel(*refs, act, has_bias, has_ln, eps):
    """o = act((LN?(x)) @ w + b?), one (row-tile, col-tile) block per grid step."""
    it = iter(refs)
    x_ref = next(it)
    g_ref = next(it) if has_ln else None
    bln_ref = next(it) if has_ln else None
    w_ref = next(it)
    b_ref = next(it) if has_bias else None
    o_ref = next(it)

    x = x_ref[...].astype(jnp.float32)
    if has_ln:
        x = _layernorm_f32(x, g_ref[...], bln_ref[...], eps)
    y = jnp.dot(x.astype(jnp.bfloat16), w_ref[...].astype(jnp.bfloat16),
                preferred_element_type=jnp.float32)
    if has_bias:
        y = y + b_ref[...]
    o_ref[...] = _apply_act(y, act).astype(o_ref.dtype)


def pl_linear(x, w, b=None, act="none", ln=None, out_dtype=jnp.float32, eps=1e-5):
    """x: (..., K) @ w: (K, N) [+ b], optional fused LayerNorm on x and activation."""
    K = x.shape[-1]
    N = w.shape[1]
    x2 = x.reshape(-1, K)
    M = x2.shape[0]
    tm, tn = _row_tile(M), _col_tile(N)

    in_specs = [pl.BlockSpec((tm, K), lambda i, j: (i, 0))]
    args = [x2]
    if ln is not None:
        g, bln = ln
        in_specs += [pl.BlockSpec((1, K), lambda i, j: (0, 0)),
                     pl.BlockSpec((1, K), lambda i, j: (0, 0))]
        args += [g.reshape(1, K).astype(jnp.float32),
                 bln.reshape(1, K).astype(jnp.float32)]
    in_specs.append(pl.BlockSpec((K, tn), lambda i, j: (0, j)))
    args.append(w)
    if b is not None:
        in_specs.append(pl.BlockSpec((1, tn), lambda i, j: (0, j)))
        args.append(b.reshape(1, N).astype(jnp.float32))

    out = pl.pallas_call(
        functools.partial(_linear_kernel, act=act, has_bias=b is not None,
                          has_ln=ln is not None, eps=eps),
        out_shape=jax.ShapeDtypeStruct((M, N), out_dtype),
        grid=(pl.cdiv(M, tm), pl.cdiv(N, tn)),
        in_specs=in_specs,
        out_specs=pl.BlockSpec((tm, tn), lambda i, j: (i, j)),
        compiler_params=_cparams(("parallel", "parallel")),
    )(*args)
    return out.reshape(*x.shape[:-1], N)


def _mlp_kernel(*refs, act1, act2, has_ln, has_b1, has_b2, eps):
    """o = act2(act1(LN?(x) @ w1 + b1?) @ w2 + b2?); hidden tile never leaves VMEM."""
    it = iter(refs)
    x_ref = next(it)
    g_ref = next(it) if has_ln else None
    bln_ref = next(it) if has_ln else None
    w1_ref = next(it)
    b1_ref = next(it) if has_b1 else None
    w2_ref = next(it)
    b2_ref = next(it) if has_b2 else None
    o_ref = next(it)
    acc_ref = next(it)

    h = pl.program_id(1)

    @pl.when(h == 0)
    def _():
        acc_ref[...] = jnp.zeros_like(acc_ref)

    x = x_ref[...].astype(jnp.float32)
    if has_ln:
        x = _layernorm_f32(x, g_ref[...], bln_ref[...], eps)
    hid = jnp.dot(x.astype(jnp.bfloat16), w1_ref[...].astype(jnp.bfloat16),
                  preferred_element_type=jnp.float32)
    if has_b1:
        hid = hid + b1_ref[...]
    hid = _apply_act(hid, act1)
    acc_ref[...] += jnp.dot(hid.astype(jnp.bfloat16), w2_ref[...].astype(jnp.bfloat16),
                            preferred_element_type=jnp.float32)

    @pl.when(h == pl.num_programs(1) - 1)
    def _():
        y = acc_ref[...]
        if has_b2:
            y = y + b2_ref[...]
        o_ref[...] = _apply_act(y, act2).astype(o_ref.dtype)


def pl_mlp(x, w1, b1, w2, b2, ln=None, act1="none", act2="none",
           out_dtype=jnp.float32, eps=1e-5):
    """Fused two-layer MLP: x -> w1 (hidden, tiled over grid axis 1) -> w2, f32 acc."""
    K = x.shape[-1]
    H = w1.shape[1]
    N = w2.shape[1]
    x2 = x.reshape(-1, K)
    M = x2.shape[0]
    tm = _row_tile(M)
    th = _TH if (H > _TH and H % _TH == 0) else H

    in_specs = [pl.BlockSpec((tm, K), lambda i, h: (i, 0))]
    args = [x2]
    if ln is not None:
        g, bln = ln
        in_specs += [pl.BlockSpec((1, K), lambda i, h: (0, 0)),
                     pl.BlockSpec((1, K), lambda i, h: (0, 0))]
        args += [g.reshape(1, K).astype(jnp.float32),
                 bln.reshape(1, K).astype(jnp.float32)]
    in_specs.append(pl.BlockSpec((K, th), lambda i, h: (0, h)))
    args.append(w1)
    if b1 is not None:
        in_specs.append(pl.BlockSpec((1, th), lambda i, h: (0, h)))
        args.append(b1.reshape(1, H).astype(jnp.float32))
    in_specs.append(pl.BlockSpec((th, N), lambda i, h: (h, 0)))
    args.append(w2)
    if b2 is not None:
        in_specs.append(pl.BlockSpec((1, N), lambda i, h: (0, 0)))
        args.append(b2.reshape(1, N).astype(jnp.float32))

    out = pl.pallas_call(
        functools.partial(_mlp_kernel, act1=act1, act2=act2, has_ln=ln is not None,
                          has_b1=b1 is not None, has_b2=b2 is not None, eps=eps),
        out_shape=jax.ShapeDtypeStruct((M, N), out_dtype),
        grid=(pl.cdiv(M, tm), pl.cdiv(H, th)),
        in_specs=in_specs,
        out_specs=pl.BlockSpec((tm, N), lambda i, h: (i, 0)),
        scratch_shapes=[pltpu.VMEM((tm, N), jnp.float32)],
        compiler_params=_cparams(("parallel", "arbitrary")),
    )(*args)
    return out.reshape(*x.shape[:-1], N)


def _ln_kernel(x_ref, g_ref, b_ref, o_ref, *, eps):
    x = x_ref[...].astype(jnp.float32)
    o_ref[...] = _layernorm_f32(x, g_ref[...], b_ref[...], eps).astype(o_ref.dtype)


def pl_layernorm(x, g, b, eps=1e-5, out_dtype=jnp.float32):
    D = x.shape[-1]
    x2 = x.reshape(-1, D)
    M = x2.shape[0]
    tm = _row_tile(M)
    out = pl.pallas_call(
        functools.partial(_ln_kernel, eps=eps),
        out_shape=jax.ShapeDtypeStruct((M, D), out_dtype),
        grid=(pl.cdiv(M, tm),),
        in_specs=[pl.BlockSpec((tm, D), lambda i: (i, 0)),
                  pl.BlockSpec((1, D), lambda i: (0, 0)),
                  pl.BlockSpec((1, D), lambda i: (0, 0))],
        out_specs=pl.BlockSpec((tm, D), lambda i: (i, 0)),
        compiler_params=_cparams(("parallel",)),
    )(x2, g.reshape(1, D).astype(jnp.float32), b.reshape(1, D).astype(jnp.float32))
    return out.reshape(x.shape)


def _attn_kernel(q_ref, kv_ref, o_ref, *, heads, hd, scale):
    """One (batch, q-row tile) per grid step; loops over heads, lane-dense (tq, D) store."""
    D = heads * hd
    q_all = q_ref[0]                                   # (tq, 3D) bf16; q stripe = [:, :D]
    kv = kv_ref[0]                                     # (L, 3D)  bf16
    ctxs = []
    for h in range(heads):
        qh = (q_all[:, h * hd:(h + 1) * hd].astype(jnp.float32) * scale
              ).astype(jnp.bfloat16)                                   # (tq, hd)
        kh = kv[:, D + h * hd: D + (h + 1) * hd].astype(jnp.bfloat16)  # (L, hd)
        vh = kv[:, 2 * D + h * hd: 2 * D + (h + 1) * hd].astype(jnp.bfloat16)
        s = jax.lax.dot_general(qh, kh, (((1,), (1,)), ((), ())),
                                preferred_element_type=jnp.float32)    # (tq, L)
        s = s - jnp.max(s, axis=-1, keepdims=True)
        p = jnp.exp(s)
        inv = pl.reciprocal(jnp.sum(p, axis=-1, keepdims=True), approx=True)
        ctx = jnp.dot(p.astype(jnp.bfloat16), vh, preferred_element_type=jnp.float32)
        ctxs.append(ctx * inv)
    o_ref[0] = jnp.concatenate(ctxs, axis=-1).astype(o_ref.dtype)


def pl_attention(qkv, heads, scale):
    """qkv: (B, L, 3D) with per-head stripes along the last axis -> context (B, L, D)."""
    B, L, threeD = qkv.shape
    D = threeD // 3
    hd = D // heads
    tq = L if L <= 512 else 256
    return pl.pallas_call(
        functools.partial(_attn_kernel, heads=heads, hd=hd, scale=scale),
        out_shape=jax.ShapeDtypeStruct((B, L, D), qkv.dtype),
        grid=(B, pl.cdiv(L, tq)),
        in_specs=[pl.BlockSpec((1, tq, threeD), lambda b, i: (b, i, 0)),
                  pl.BlockSpec((1, L, threeD), lambda b, i: (b, 0, 0))],
        out_specs=pl.BlockSpec((1, tq, D), lambda b, i: (b, i, 0)),
        compiler_params=_cparams(("parallel", "parallel")),
    )(qkv, qkv)


# ----------------------------------------------------------------------------
# Model pieces (glue orchestrating the Pallas kernels)
# ----------------------------------------------------------------------------
def resblock_forward(x, p, heads):
    """Pre-LN residual attention block on (B, L, D) tokens.

    The token stream is kept batch-first; per-token math is identical to the reference
    (L, B, D) layout, so no per-layer transposes are needed.
    """
    D = x.shape[-1]
    hd = D // heads
    # ln1 fused into the QKV projection
    qkv = pl_linear(x, p["in_w"], p["in_b"], ln=(p["ln1_g"], p["ln1_b"]),
                    out_dtype=jnp.bfloat16)                         # (B, L, 3D)
    ctx = pl_attention(qkv, heads, scale=1.0 / (hd ** 0.5))         # (B, L, D)
    x = x + pl_linear(ctx, p["out_w"], p["out_b"], out_dtype=jnp.bfloat16)
    # ln2 + fc + QuickGELU + proj in one fused kernel (4D-wide hidden never hits HBM)
    x = x + pl_mlp(x, p["fc_w"], p["fc_b"], p["proj_w"], p["proj_b"],
                   ln=(p["ln2_g"], p["ln2_b"]), act1="quick_gelu",
                   out_dtype=jnp.bfloat16)
    # TODO(synk): the reference block also returns the attention map (collected only at
    # layer 12 into an unused local); it does not affect any returned output, so omitted.
    return x


def channel_attention(x, p):
    """x: (L, B, D) -> (L, 1, D) gate (pooling over B, as in the PyTorch code)."""
    L = x.shape[0]
    avg = jnp.mean(x, axis=1)                      # AdaptiveAvgPool1d(1) over B
    mx = jnp.max(x, axis=1)                        # AdaptiveMaxPool1d(1)
    both = jnp.concatenate([avg, mx], axis=0)      # batch the two fc chains into one call
    red = pl_mlp(both, p["ca_w1"], None, p["ca_w2"], None, act1="relu")
    out = jax.nn.sigmoid(red[:L] + red[L:])        # (L, D)
    return out[:, None, :]


def spatial_attention(x, p):
    """x: (L, B, D) -> (L, B, 1) gate (tiny conv1d over the length-B axis; kept in glue)."""
    L, B, D = x.shape
    xt = jnp.transpose(x, (0, 2, 1))                    # (L, D, B)
    avg = jnp.mean(xt, axis=1, keepdims=True)           # (L, 1, B)
    mx = jnp.max(xt, axis=1, keepdims=True)             # (L, 1, B)
    cat = jnp.concatenate([avg, mx], axis=1)            # (L, 2, B)
    w = p["sa_w"]                                       # (1, 2, 7)
    bconv = p["sa_b"]                                   # (1,)
    xp = jnp.pad(cat, ((0, 0), (0, 0), (3, 3)))
    out = bconv[0]
    for t in range(7):
        out = out + jnp.einsum("lcj,c->lj", xp[:, :, t:t + B], w[0, :, t])
    out = jax.nn.sigmoid(out)[:, None, :]               # (L, 1, B)
    return jnp.transpose(out, (0, 2, 1))                # (L, B, 1)


def frequency_attention(x, p):
    """x: (L, B, D) -> (L, 1, D) gate from FFT magnitude statistics."""
    xt = jnp.transpose(x, (0, 2, 1)).astype(jnp.float32)   # (L, D, B)
    # TODO(synk): torch.fft.fft2 has no Pallas primitive; computed with jnp.fft.fft2 in glue.
    mag = jnp.abs(jnp.fft.fft2(xt))                         # (L, D, B)
    freq_info = (jnp.mean(mag, axis=-1) + jnp.max(mag, axis=-1)) / 2.0  # (L, D)
    att = pl_mlp(freq_info, p["fa_w1"], None, p["fa_w2"], None,
                 act1="relu", act2="sigmoid")
    return att[:, None, :]


def clip_adapter(x, p):
    """ClipAdapter.forward on (L, B, D) tokens -> (adapter_x, y)."""
    x = x.astype(jnp.float32)
    ca = channel_attention(x, p) * x
    sa = spatial_attention(ca, p) * ca
    fa = frequency_attention(x, p) * x
    # batch the four fc1 matmuls (x, ca, sa, fa) into one weight DMA / kernel launch
    stacked = jnp.stack([x, ca, sa, fa], axis=0)                      # (4, L, B, D)
    red = pl_linear(stacked, p["fc1_w"], act="leaky_relu")            # (4, L, B, bott)
    adapter_x = 0.4 * red[0] + 0.2 * red[1] + 0.2 * red[2] + 0.2 * red[3]
    adapter_y = pl_linear(adapter_x, p["fc2_w"], act="leaky_relu")
    y = 0.3 * adapter_y + 0.2 * ca + 0.2 * sa + 0.3 * fa
    return adapter_x, y


def clip_inplanted_forward(img, params, cfg):
    """img: (B, C, H, W) NCHW -> (pooled, seg_patch_tokens, det_patch_tokens)."""
    B, C, H, W = img.shape
    P = cfg["patch"]
    D = cfg["width"]
    gh, gw = H // P, W // P

    # conv1 (stride == kernel) as patchify + matmul
    patches = img.reshape(B, C, gh, P, gw, P).transpose(0, 2, 4, 1, 3, 5)
    patches = patches.reshape(B, gh * gw, C * P * P)
    x = pl_linear(patches, params["conv1_w"])                         # (B, N, D) f32

    cls = jnp.broadcast_to(params["class_embedding"].astype(jnp.float32), (B, 1, D))
    x = jnp.concatenate([cls, x], axis=1)                             # (B, N+1, D)
    x = x + params["pos_embedding"][None].astype(jnp.float32)
    # TODO(synk): patch_dropout is nn.Identity at inference (prob=0); modeled as identity.
    x = pl_layernorm(x, params["ln_pre_g"], params["ln_pre_b"], out_dtype=jnp.bfloat16)
    # Token stream stays batch-first (B, L, D) in bf16; the adapters get the reference
    # (L, B, D) view explicitly at the feature layers.

    seg_tokens, det_tokens = [], []
    for i in range(cfg["layers"]):
        x = resblock_forward(x, params["blocks"][i], cfg["heads"])
        if (i + 1) in cfg["features"]:
            idx = cfg["features"].index(i + 1)
            x_lbd = jnp.transpose(x, (1, 0, 2))                       # (L, B, D)
            seg_med, seg_out = clip_adapter(x_lbd, params["seg_adapters"][idx])
            det_med, det_out = clip_adapter(x_lbd, params["det_adapters"][idx])
            mixed = 0.8 * x_lbd.astype(jnp.float32) + 0.1 * seg_out + 0.1 * det_out
            x = jnp.transpose(mixed, (1, 0, 2)).astype(jnp.bfloat16)
            seg_tokens.append(seg_med)
            det_tokens.append(det_med)

    seg_tokens = [jnp.transpose(t, (1, 0, 2)) for t in seg_tokens]    # (B, L, bott)
    det_tokens = [jnp.transpose(t, (1, 0, 2)) for t in det_tokens]

    # _global_pool (pool_type='tok'); ln_post fused into the projection matmul
    pooled = x[:, 0]
    pooled = pl_linear(pooled, params["proj"],
                       ln=(params["ln_post_g"], params["ln_post_b"]))
    return pooled, seg_tokens, det_tokens


# ----------------------------------------------------------------------------
# Deterministic synthetic parameter initialization (matmul weights stored in bf16)
# ----------------------------------------------------------------------------
def init_params(key, cfg):
    D = cfg["width"]
    P = cfg["patch"]
    C = cfg["in_ch"]
    mlp = cfg["mlp_ratio"] * D
    bott = cfg["bottleneck"]
    out_dim = cfg["out_dim"]
    n_tok = (cfg["image_size"] // P) ** 2 + 1
    keys = iter(jax.random.split(key, 4096))

    def w(shape, scale=0.02):                 # matmul weights -> bf16 (halves weight DMA)
        return (scale * jax.random.normal(next(keys), shape)).astype(jnp.bfloat16)

    def fw(shape, scale=0.02):                # small / non-matmul params stay f32
        return (scale * jax.random.normal(next(keys), shape)).astype(jnp.float32)

    zeros = lambda s: jnp.zeros(s, jnp.float32)
    ones = lambda s: jnp.ones(s, jnp.float32)

    params = {
        "conv1_w": w((C * P * P, D)),
        "class_embedding": fw((D,)),
        "pos_embedding": fw((n_tok, D)),
        "ln_pre_g": ones((D,)), "ln_pre_b": zeros((D,)),
        "ln_post_g": ones((D,)), "ln_post_b": zeros((D,)),
        "proj": w((D, out_dim)),
        "blocks": [], "seg_adapters": [], "det_adapters": [],
    }
    for _ in range(cfg["layers"]):
        params["blocks"].append({
            "ln1_g": ones((D,)), "ln1_b": zeros((D,)),
            "in_w": w((D, 3 * D)), "in_b": zeros((3 * D,)),
            "out_w": w((D, D)), "out_b": zeros((D,)),
            "ln2_g": ones((D,)), "ln2_b": zeros((D,)),
            "fc_w": w((D, mlp)), "fc_b": zeros((mlp,)),
            "proj_w": w((mlp, D)), "proj_b": zeros((D,)),
        })

    def adapter():
        r = D // 16
        return {
            "fc1_w": w((D, bott)),
            "fc2_w": w((bott, D)),
            "ca_w1": w((D, r)), "ca_w2": w((r, D)),
            "fa_w1": w((D, r)), "fa_w2": w((r, D)),
            "sa_w": fw((1, 2, 7)), "sa_b": zeros((1,)),
        }

    for _ in cfg["features"]:
        params["seg_adapters"].append(adapter())
        params["det_adapters"].append(adapter())
    return params


# ----------------------------------------------------------------------------
if __name__ == "__main__":
    # Reference hardcodes width=1024, bottleneck=768, 24 layers; shrunk here for a small
    # runnable example (structure / semantics unchanged).
    cfg = dict(
        width=64, heads=4, layers=4, mlp_ratio=4,
        patch=8, image_size=16, in_ch=3,
        bottleneck=32, out_dim=32,
        features=(2, 4),
    )
    root = jax.random.PRNGKey(0)
    k_params, k_img = jax.random.split(root)
    params = init_params(k_params, cfg)
    img = jax.random.normal(k_img, (2, cfg["in_ch"], cfg["image_size"], cfg["image_size"]),
                            dtype=jnp.float32)

    fwd = jax.jit(lambda im: clip_inplanted_forward(im, params, cfg))
    pooled, seg_tokens, det_tokens = fwd(img)
    jax.block_until_ready(pooled)
    jax.block_until_ready(seg_tokens)
    jax.block_until_ready(det_tokens)

    assert pooled.shape == (2, cfg["out_dim"])
    assert len(seg_tokens) == len(cfg["features"])
    assert len(det_tokens) == len(cfg["features"])
    n_tok = (cfg["image_size"] // cfg["patch"]) ** 2 + 1
    assert seg_tokens[0].shape == (2, n_tok, cfg["bottleneck"])
    print("KERNEL_OK")
</pallas_src>

<mosaic_0001>
module attributes {stable_mosaic.version = 11 : i64} {
  func.func @_linear_kernel(%arg0: i32, %arg1: i32, %arg2: memref<8x192xf32, #tpu.memory_space<vmem>>, %arg3: memref<192x64xbf16, #tpu.memory_space<vmem>>, %arg4: memref<8x64xf32, #tpu.memory_space<vmem>>) attributes {dimension_semantics = [#tpu.dimension_semantics<parallel>, #tpu.dimension_semantics<parallel>], iteration_bounds = array<i64: 1, 1>, scalar_prefetch = 0 : i64, scratch_operands = 0 : i64, tpu.core_type = #tpu.core_type<tc>, window_params = [{transform_indices = @transform_0, window_bounds = array<i64: 8, 192>}, {transform_indices = @transform_1, window_bounds = array<i64: 192, 64>}, {transform_indices = @transform_2, window_bounds = array<i64: 8, 64>}]} {
    %c0 = arith.constant 0 : index
    %c0_0 = arith.constant 0 : index
    %0 = vector.load %arg2[%c0, %c0_0] : memref<8x192xf32, #tpu.memory_space<vmem>>, vector<8x192xf32>
    %1 = arith.truncf %0 : vector<8x192xf32> to vector<8x192xbf16>
    %c0_1 = arith.constant 0 : index
    %c0_2 = arith.constant 0 : index
    %2 = vector.load %arg3[%c0_1, %c0_2] : memref<192x64xbf16, #tpu.memory_space<vmem>>, vector<192x64xbf16>
    %cst = arith.constant dense<0.000000e+00> : vector<8x64xf32>
    %3 = tpu.matmul %1, %2, %cst {dimension_numbers = #tpu.dot_dimension_numbers<[1], [0], [0], [1], [0, 0, 1, 1], [], []>} : vector<8x192xbf16>, vector<192x64xbf16>, vector<8x64xf32> -> vector<8x64xf32>
    %c0_3 = arith.constant 0 : index
    %c0_4 = arith.constant 0 : index
    %4 = vector.load %arg4[%c0_3, %c0_4] : memref<8x64xf32, #tpu.memory_space<vmem>>, vector<8x64xf32>
    tpu.vector_store %arg4[%c0_3, %c0_4], %3 {strides = array<i32>} : memref<8x64xf32, #tpu.memory_space<vmem>>, vector<8x64xf32>,
    return
  }
  func.func @transform_0(%arg0: i32, %arg1: i32) -> (i32, i32) {
    %c0_i32 = arith.constant 0 : i32
    %c0_i32_0 = arith.constant 0 : i32
    return %arg0, %c0_i32 : i32, i32
  }
  func.func @transform_1(%arg0: i32, %arg1: i32) -> (i32, i32) {
    %c0_i32 = arith.constant 0 : i32
    %c0_i32_0 = arith.constant 0 : i32
    return %c0_i32, %arg1 : i32, i32
  }
  func.func @transform_2(%arg0: i32, %arg1: i32) -> (i32, i32) {
    %c0_i32 = arith.constant 0 : i32
    return %arg0, %arg1 : i32, i32
  }
}

module attributes {stable_mosaic.version = 11 : i64} {
  func.func @_ln_kernel(%arg0: i32, %arg1: memref<10x64xf32, #tpu.memory_space<vmem>>, %arg2: memref<1x64xf32, #tpu.memory_space<vmem>>, %arg3: memref<1x64xf32, #tpu.memory_space<vmem>>, %arg4: memref<10x64xbf16, #tpu.memory_space<vmem>>) attributes {dimension_semantics = [#tpu.dimension_semantics<parallel>], iteration_bounds = array<i64: 1>, scalar_prefetch = 0 : i64, scratch_operands = 0 : i64, tpu.core_type = #tpu.core_type<tc>, window_params = [{transform_indices = @transform_0, window_bounds = array<i64: 10, 64>}, {pipeline_mode = #tpu.pipeline_mode<synchronous>, transform_indices = @transform_1, window_bounds = array<i64: 1, 64>}, {pipeline_mode = #tpu.pipeline_mode<synchronous>, transform_indices = @transform_2, window_bounds = array<i64: 1, 64>}, {transform_indices = @transform_3, window_bounds = array<i64: 10, 64>}]} {
    %c0 = arith.constant 0 : index
    %c0_0 = arith.constant 0 : index
    %0 = vector.load %arg1[%c0, %c0_0] : memref<10x64xf32, #tpu.memory_space<vmem>>, vector<10x64xf32>
    %c0_1 = arith.constant 0 : index
    %c0_2 = arith.constant 0 : index
    %1 = vector.load %arg2[%c0_1, %c0_2] : memref<1x64xf32, #tpu.memory_space<vmem>>, vector<1x64xf32>
    %c0_3 = arith.constant 0 : index
    %c0_4 = arith.constant 0 : index
    %2 = vector.load %arg3[%c0_3, %c0_4] : memref<1x64xf32, #tpu.memory_space<vmem>>, vector<1x64xf32>
    %cst = arith.constant dense<0.000000e+00> : vector<10xf32>
    %3 = vector.multi_reduction <add>, %0, %cst [1] : vector<10x64xf32> to vector<10xf32>
    %4 = vector.shape_cast %3 : vector<10xf32> to vector<10x1xf32>
    %cst_5 = arith.constant 6.400000e+01 : f32
    %5 = vector.broadcast %cst_5 : f32 to vector<10x1xf32>
    %6 = arith.divf %4, %5 : vector<10x1xf32>
    %7 = vector.broadcast %6 : vector<10x1xf32> to vector<10x64xf32>
    %8 = arith.subf %0, %7 : vector<10x64xf32>
    %9 = arith.mulf %8, %8 : vector<10x64xf32>
    %cst_6 = arith.constant dense<0.000000e+00> : vector<10xf32>
    %10 = vector.multi_reduction <add>, %9, %cst_6 [1] : vector<10x64xf32> to vector<10xf32>
    %11 = vector.shape_cast %10 : vector<10xf32> to vector<10x1xf32>
    %cst_7 = arith.constant 6.400000e+01 : f32
    %12 = vector.broadcast %cst_7 : f32 to vector<10x1xf32>
    %13 = arith.divf %11, %12 : vector<10x1xf32>
    %cst_8 = arith.constant 9.99999974E-6 : f32
    %14 = vector.broadcast %cst_8 : f32 to vector<10x1xf32>
    %15 = arith.addf %13, %14 : vector<10x1xf32>
    %16 = math.rsqrt %15 : vector<10x1xf32>
    %17 = vector.broadcast %16 : vector<10x1xf32> to vector<10x64xf32>
    %18 = arith.mulf %8, %17 : vector<10x64xf32>
    %19 = vector.broadcast %1 : vector<1x64xf32> to vector<10x64xf32>
    %20 = arith.mulf %18, %19 : vector<10x64xf32>
    %21 = vector.broadcast %2 : vector<1x64xf32> to vector<10x64xf32>
    %22 = arith.addf %20, %21 : vector<10x64xf32>
    %23 = arith.truncf %22 : vector<10x64xf32> to vector<10x64xbf16>
    %c0_9 = arith.constant 0 : index
    %c0_10 = arith.constant 0 : index
    %24 = vector.load %arg4[%c0_9, %c0_10] : memref<10x64xbf16, #tpu.memory_space<vmem>>, vector<10x64xbf16>
    tpu.vector_store %arg4[%c0_9, %c0_10], %23 {strides = array<i32>} : memref<10x64xbf16, #tpu.memory_space<vmem>>, vector<10x64xbf16>,
    return
  }
  func.func @transform_0(%arg0: i32) -> (i32, i32) {
    %c0_i32 = arith.constant 0 : i32
    %c0_i32_0 = arith.constant 0 : i32
    return %arg0, %c0_i32 : i32, i32
  }
  func.func @transform_1(%arg0: i32) -> (i32, i32) {
    %c0_i32 = arith.constant 0 : i32
    %c0_i32_0 = arith.constant 0 : i32
    %c0_i32_1 = arith.constant 0 : i32
    return %c0_i32, %c0_i32_0 : i32, i32
  }
  func.func @transform_2(%arg0: i32) -> (i32, i32) {
    %c0_i32 = arith.constant 0 : i32
    %c0_i32_0 = arith.constant 0 : i32
    %c0_i32_1 = arith.constant 0 : i32
    return %c0_i32, %c0_i32_0 : i32, i32
  }
  func.func @transform_3(%arg0: i32) -> (i32, i32) {
    %c0_i32 = arith.constant 0 : i32
    %c0_i32_0 = arith.constant 0 : i32
    return %arg0, %c0_i32 : i32, i32
  }
}

module attributes {stable_mosaic.version = 11 : i64} {
  func.func @_linear_kernel(%arg0: i32, %arg1: i32, %arg2: memref<10x64xbf16, #tpu.memory_space<vmem>>, %arg3: memref<1x64xf32, #tpu.memory_space<vmem>>, %arg4: memref<1x64xf32, #tpu.memory_space<vmem>>, %arg5: memref<64x192xbf16, #tpu.memory_space<vmem>>, %arg6: memref<1x192xf32, #tpu.memory_space<vmem>>, %arg7: memref<10x192xbf16, #tpu.memory_space<vmem>>) attributes {dimension_semantics = [#tpu.dimension_semantics<parallel>, #tpu.dimension_semantics<parallel>], iteration_bounds = array<i64: 1, 1>, scalar_prefetch = 0 : i64, scratch_operands = 0 : i64, tpu.core_type = #tpu.core_type<tc>, window_params = [{transform_indices = @transform_0, window_bounds = array<i64: 10, 64>}, {pipeline_mode = #tpu.pipeline_mode<synchronous>, transform_indices = @transform_1, window_bounds = array<i64: 1, 64>}, {pipeline_mode = #tpu.pipeline_mode<synchronous>, transform_indices = @transform_2, window_bounds = array<i64: 1, 64>}, {transform_indices = @transform_3, window_bounds = array<i64: 64, 192>}, {transform_indices = @transform_4, window_bounds = array<i64: 1, 192>}, {transform_indices = @transform_5, window_bounds = array<i64: 10, 192>}]} {
    %c0 = arith.constant 0 : index
    %c0_0 = arith.constant 0 : index
    %0 = vector.load %arg2[%c0, %c0_0] : memref<10x64xbf16, #tpu.memory_space<vmem>>, vector<10x64xbf16>
    %1 = arith.extf %0 : vector<10x64xbf16> to vector<10x64xf32>
    %c0_1 = arith.constant 0 : index
    %c0_2 = arith.constant 0 : index
    %2 = vector.load %arg3[%c0_1, %c0_2] : memref<1x64xf32, #tpu.memory_space<vmem>>, vector<1x64xf32>
    %c0_3 = arith.constant 0 : index
    %c0_4 = arith.constant 0 : index
    %3 = vector.load %arg4[%c0_3, %c0_4] : memref<1x64xf32, #tpu.memory_space<vmem>>, vector<1x64xf32>
    %cst = arith.constant dense<0.000000e+00> : vector<10xf32>
    %4 = vector.multi_reduction <add>, %1, %cst [1] : vector<10x64xf32> to vector<10xf32>
    %5 = vector.shape_cast %4 : vector<10xf32> to vector<10x1xf32>
    %cst_5 = arith.constant 6.400000e+01 : f32
    %6 = vector.broadcast %cst_5 : f32 to vector<10x1xf32>
    %7 = arith.divf %5, %6 : vector<10x1xf32>
    %8 = vector.broadcast %7 : vector<10x1xf32> to vector<10x64xf32>
    %9 = arith.subf %1, %8 : vector<10x64xf32>
    %10 = arith.mulf %9, %9 : vector<10x64xf32>
    %cst_6 = arith.constant dense<0.000000e+00> : vector<10xf32>
    %11 = vector.multi_reduction <add>, %10, %cst_6 [1] : vector<10x64xf32> to vector<10xf32>
    %12 = vector.shape_cast %11 : vector<10xf32> to vector<10x1xf32>
    %cst_7 = arith.constant 6.400000e+01 : f32
    %13 = vector.broadcast %cst_7 : f32 to vector<10x1xf32>
    %14 = arith.divf %12, %13 : vector<10x1xf32>
    %cst_8 = arith.constant 9.99999974E-6 : f32
    %15 = vector.broadcast %cst_8 : f32 to vector<10x1xf32>
    %16 = arith.addf %14, %15 : vector<10x1xf32>
    %17 = math.rsqrt %16 : vector<10x1xf32>
    %18 = vector.broadcast %17 : vector<10x1xf32> to vector<10x64xf32>
    %19 = arith.mulf %9, %18 : vector<10x64xf32>
    %20 = vector.broadcast %2 : vector<1x64xf32> to vector<10x64xf32>
    %21 = arith.mulf %19, %20 : vector<10x64xf32>
    %22 = vector.broadcast %3 : vector<1x64xf32> to vector<10x64xf32>
    %23 = arith.addf %21, %22 : vector<10x64xf32>
    %24 = arith.truncf %23 : vector<10x64xf32> to vector<10x64xbf16>
    %c0_9 = arith.constant 0 : index
    %c0_10 = arith.constant 0 : index
    %25 = vector.load %arg5[%c0_9, %c0_10] : memref<64x192xbf16, #tpu.memory_space<vmem>>, vector<64x192xbf16>
    %cst_11 = arith.constant dense<0.000000e+00> : vector<10x192xf32>
    %26 = tpu.matmul %24, %25, %cst_11 {dimension_numbers = #tpu.dot_dimension_numbers<[1], [0], [0], [1], [0, 0, 1, 1], [], []>} : vector<10x64xbf16>, vector<64x192xbf16>, vector<10x192xf32> -> vector<10x192xf32>
    %c0_12 = arith.constant 0 : index
    %c0_13 = arith.constant 0 : index
    %27 = vector.load %arg6[%c0_12, %c0_13] : memref<1x192xf32, #tpu.memory_space<vmem>>, vector<1x192xf32>
    %28 = vector.broadcast %27 : vector<1x192xf32> to vector<10x192xf32>
    %29 = arith.addf %26, %28 : vector<10x192xf32>
    %30 = arith.truncf %29 : vector<10x192xf32> to vector<10x192xbf16>
    %c0_14 = arith.constant 0 : index
    %c0_15 = arith.constant 0 : index
    %31 = vector.load %arg7[%c0_14, %c0_15] : memref<10x192xbf16, #tpu.memory_space<vmem>>, vector<10x192xbf16>
    tpu.vector_store %arg7[%c0_14, %c0_15], %30 {strides = array<i32>} : memref<10x192xbf16, #tpu.memory_space<vmem>>, vector<10x192xbf16>,
    return
  }
  func.func @transform_0(%arg0: i32, %arg1: i32) -> (i32, i32) {
    %c0_i32 = arith.constant 0 : i32
    %c0_i32_0 = arith.constant 0 : i32
    return %arg0, %c0_i32 : i32, i32
  }
  func.func @transform_1(%arg0: i32, %arg1: i32) -> (i32, i32) {
    %c0_i32 = arith.constant 0 : i32
    %c0_i32_0 = arith.constant 0 : i32
    %c0_i32_1 = arith.constant 0 : i32
    return %c0_i32, %c0_i32_0 : i32, i32
  }
  func.func @transform_2(%arg0: i32, %arg1: i32) -> (i32, i32) {
    %c0_i32 = arith.constant 0 : i32
    %c0_i32_0 = arith.constant 0 : i32
    %c0_i32_1 = arith.constant 0 : i32
    return %c0_i32, %c0_i32_0 : i32, i32
  }
  func.func @transform_3(%arg0: i32, %arg1: i32) -> (i32, i32) {
    %c0_i32 = arith.constant 0 : i32
    %c0_i32_0 = arith.constant 0 : i32
    return %c0_i32, %arg1 : i32, i32
  }
  func.func @transform_4(%arg0: i32, %arg1: i32) -> (i32, i32) {
    %c0_i32 = arith.constant 0 : i32
    %c0_i32_0 = arith.constant 0 : i32
    return %c0_i32, %arg1 : i32, i32
  }
  func.func @transform_5(%arg0: i32, %arg1: i32) -> (i32, i32) {
    %c0_i32 = arith.constant 0 : i32
    return %arg0, %arg1 : i32, i32
  }
}

module attributes {stable_mosaic.version = 11 : i64} {
  func.func @_attn_kernel(%arg0: i32, %arg1: i32, %arg2: memref<1x5x192xbf16, #tpu.memory_space<vmem>>, %arg3: memref<1x5x192xbf16, #tpu.memory_space<vmem>>, %arg4: memref<1x5x64xbf16, #tpu.memory_space<vmem>>) attributes {dimension_semantics = [#tpu.dimension_semantics<parallel>, #tpu.dimension_semantics<parallel>], iteration_bounds = array<i64: 2, 1>, scalar_prefetch = 0 : i64, scratch_operands = 0 : i64, tpu.core_type = #tpu.core_type<tc>, window_params = [{transform_indices = @transform_0, window_bounds = array<i64: 1, 5, 192>}, {transform_indices = @transform_1, window_bounds = array<i64: 1, 5, 192>}, {transform_indices = @transform_2, window_bounds = array<i64: 1, 5, 64>}]} {
    %c0 = arith.constant 0 : index
    %c0_0 = arith.constant 0 : index
    %c0_1 = arith.constant 0 : index
    %0 = vector.load %arg2[%c0, %c0_0, %c0_1] : memref<1x5x192xbf16, #tpu.memory_space<vmem>>, vector<1x5x192xbf16>
    %1 = vector.shape_cast %0 : vector<1x5x192xbf16> to vector<5x192xbf16>
    %c0_2 = arith.constant 0 : index
    %c0_3 = arith.constant 0 : index
    %c0_4 = arith.constant 0 : index
    %2 = vector.load %arg3[%c0_2, %c0_3, %c0_4] : memref<1x5x192xbf16, #tpu.memory_space<vmem>>, vector<1x5x192xbf16>
    %3 = vector.shape_cast %2 : vector<1x5x192xbf16> to vector<5x192xbf16>
    %4 = vector.extract_strided_slice %1 {offsets = [0, 0], sizes = [5, 16], strides = [1, 1]} : vector<5x192xbf16> to vector<5x16xbf16>
    %5 = arith.extf %4 : vector<5x16xbf16> to vector<5x16xf32>
    %cst = arith.constant 2.500000e-01 : f32
    %6 = vector.broadcast %cst : f32 to vector<5x16xf32>
    %7 = arith.mulf %5, %6 : vector<5x16xf32>
    %8 = arith.truncf %7 : vector<5x16xf32> to vector<5x16xbf16>
    %9 = vector.extract_strided_slice %3 {offsets = [0, 64], sizes = [5, 16], strides = [1, 1]} : vector<5x192xbf16> to vector<5x16xbf16>
    %10 = vector.extract_strided_slice %3 {offsets = [0, 128], sizes = [5, 16], strides = [1, 1]} : vector<5x192xbf16> to vector<5x16xbf16>
    %cst_5 = arith.constant dense<0.000000e+00> : vector<5x5xf32>
    %11 = tpu.matmul %8, %9, %cst_5 {dimension_numbers = #tpu.dot_dimension_numbers<[1], [1], [0], [0], [0, 0, 1, 0], [], []>} : vector<5x16xbf16>, vector<5x16xbf16>, vector<5x5xf32> -> vector<5x5xf32>
    %cst_6 = arith.constant dense<0xFF800000> : vector<5xf32>
    %12 = vector.multi_reduction <maximumf>, %11, %cst_6 [1] : vector<5x5xf32> to vector<5xf32>
    %13 = vector.shape_cast %12 : vector<5xf32> to vector<5x1xf32>
    %14 = vector.broadcast %13 : vector<5x1xf32> to vector<5x5xf32>
    %15 = arith.subf %11, %14 : vector<5x5xf32>
    %16 = math.exp %15 : vector<5x5xf32>
    %cst_7 = arith.constant dense<0.000000e+00> : vector<5xf32>
    %17 = vector.multi_reduction <add>, %16, %cst_7 [1] : vector<5x5xf32> to vector<5xf32>
    %18 = vector.shape_cast %17 : vector<5xf32> to vector<5x1xf32>
    %19 = tpu.reciprocal %18 {approx = true} : vector<5x1xf32> -> vector<5x1xf32>
    %20 = arith.truncf %16 : vector<5x5xf32> to vector<5x5xbf16>
    %cst_8 = arith.constant dense<0.000000e+00> : vector<5x16xf32>
    %21 = tpu.matmul %20, %10, %cst_8 {dimension_numbers = #tpu.dot_dimension_numbers<[1], [0], [0], [1], [0, 0, 1, 1], [], []>} : vector<5x5xbf16>, vector<5x16xbf16>, vector<5x16xf32> -> vector<5x16xf32>
    %22 = vector.broadcast %19 : vector<5x1xf32> to vector<5x16xf32>
    %23 = arith.mulf %21, %22 : vector<5x16xf32>
    %24 = vector.extract_strided_slice %1 {offsets = [0, 16], sizes = [5, 16], strides = [1, 1]} : vector<5x192xbf16> to vector<5x16xbf16>
    %25 = arith.extf %24 : vector<5x16xbf16> to vector<5x16xf32>
    %cst_9 = arith.constant 2.500000e-01 : f32
    %26 = vector.broadcast %cst_9 : f32 to vector<5x16xf32>
    %27 = arith.mulf %25, %26 : vector<5x16xf32>
    %28 = arith.truncf %27 : vector<5x16xf32> to vector<5x16xbf16>
    %29 = vector.extract_strided_slice %3 {offsets = [0, 80], sizes = [5, 16], strides = [1, 1]} : vector<5x192xbf16> to vector<5x16xbf16>
    %30 = vector.extract_strided_slice %3 {offsets = [0, 144], sizes = [5, 16], strides = [1, 1]} : vector<5x192xbf16> to vector<5x16xbf16>
    %cst_10 = arith.constant dense<0.000000e+00> : vector<5x5xf32>
    %31 = tpu.matmul %28, %29, %cst_10 {dimension_numbers = #tpu.dot_dimension_numbers<[1], [1], [0], [0], [0, 0, 1, 0], [], []>} : vector<5x16xbf16>, vector<5x16xbf16>, vector<5x5xf32> -> vector<5x5xf32>
    %cst_11 = arith.constant dense<0xFF800000> : vector<5xf32>
    %32 = vector.multi_reduction <maximumf>, %31, %cst_11 [1] : vector<5x5xf32> to vector<5xf32>
    %33 = vector.shape_cast %32 : vector<5xf32> to vector<5x1xf32>
    %34 = vector.broadcast %33 : vector<5x1xf32> to vector<5x5xf32>
    %35 = arith.subf %31, %34 : vector<5x5xf32>
    %36 = math.exp %35 : vector<5x5xf32>
    %cst_12 = arith.constant dense<0.000000e+00> : vector<5xf32>
    %37 = vector.multi_reduction <add>, %36, %cst_12 [1] : vector<5x5xf32> to vector<5xf32>
    %38 = vector.shape_cast %37 : vector<5xf32> to vector<5x1xf32>
    %39 = tpu.reciprocal %38 {approx = true} : vector<5x1xf32> -> vector<5x1xf32>
    %40 = arith.truncf %36 : vector<5x5xf32> to vector<5x5xbf16>
    %cst_13 = arith.constant dense<0.000000e+00> : vector<5x16xf32>
    %41 = tpu.matmul %40, %30, %cst_13 {dimension_numbers = #tpu.dot_dimension_numbers<[1], [0], [0], [1], [0, 0, 1, 1], [], []>} : vector<5x5xbf16>, vector<5x16xbf16>, vector<5x16xf32> -> vector<5x16xf32>
    %42 = vector.broadcast %39 : vector<5x1xf32> to vector<5x16xf32>
    %43 = arith.mulf %41, %42 : vector<5x16xf32>
    %44 = vector.extract_strided_slice %1 {offsets = [0, 32], sizes = [5, 16], strides = [1, 1]} : vector<5x192xbf16> to vector<5x16xbf16>
    %45 = arith.extf %44 : vector<5x16xbf16> to vector<5x16xf32>
    %cst_14 = arith.constant 2.500000e-01 : f32
    %46 = vector.broadcast %cst_14 : f32 to vector<5x16xf32>
    %47 = arith.mulf %45, %46 : vector<5x16xf32>
    %48 = arith.truncf %47 : vector<5x16xf32> to vector<5x16xbf16>
    %49 = vector.extract_strided_slice %3 {offsets = [0, 96], sizes = [5, 16], strides = [1, 1]} : vector<5x192xbf16> to vector<5x16xbf16>
    %50 = vector.extract_strided_slice %3 {offsets = [0, 160], sizes = [5, 16], strides = [1, 1]} : vector<5x192xbf16> to vector<5x16xbf16>
    %cst_15 = arith.constant dense<0.000000e+00> : vector<5x5xf32>
    %51 = tpu.matmul %48, %49, %cst_15 {dimension_numbers = #tpu.dot_dimension_numbers<[1], [1], [0], [0], [0, 0, 1, 0], [], []>} : vector<5x16xbf16>, vector<5x16xbf16>, vector<5x5xf32> -> vector<5x5xf32>
    %cst_16 = arith.constant dense<0xFF800000> : vector<5xf32>
    %52 = vector.multi_reduction <maximumf>, %51, %cst_16 [1] : vector<5x5xf32> to vector<5xf32>
    %53 = vector.shape_cast %52 : vector<5xf32> to vector<5x1xf32>
    %54 = vector.broadcast %53 : vector<5x1xf32> to vector<5x5xf32>
    %55 = arith.subf %51, %54 : vector<5x5xf32>
    %56 = math.exp %55 : vector<5x5xf32>
    %cst_17 = arith.constant dense<0.000000e+00> : vector<5xf32>
    %57 = vector.multi_reduction <add>, %56, %cst_17 [1] : vector<5x5xf32> to vector<5xf32>
    %58 = vector.shape_cast %57 : vector<5xf32> to vector<5x1xf32>
    %59 = tpu.reciprocal %58 {approx = true} : vector<5x1xf32> -> vector<5x1xf32>
    %60 = arith.truncf %56 : vector<5x5xf32> to vector<5x5xbf16>
    %cst_18 = arith.constant dense<0.000000e+00> : vector<5x16xf32>
    %61 = tpu.matmul %60, %50, %cst_18 {dimension_numbers = #tpu.dot_dimension_numbers<[1], [0], [0], [1], [0, 0, 1, 1], [], []>} : vector<5x5xbf16>, vector<5x16xbf16>, vector<5x16xf32> -> vector<5x16xf32>
    %62 = vector.broadcast %59 : vector<5x1xf32> to vector<5x16xf32>
    %63 = arith.mulf %61, %62 : vector<5x16xf32>
    %64 = vector.extract_strided_slice %1 {offsets = [0, 48], sizes = [5, 16], strides = [1, 1]} : vector<5x192xbf16> to vector<5x16xbf16>
    %65 = arith.extf %64 : vector<5x16xbf16> to vector<5x16xf32>
    %cst_19 = arith.constant 2.500000e-01 : f32
    %66 = vector.broadcast %cst_19 : f32 to vector<5x16xf32>
    %67 = arith.mulf %65, %66 : vector<5x16xf32>
    %68 = arith.truncf %67 : vector<5x16xf32> to vector<5x16xbf16>
    %69 = vector.extract_strided_slice %3 {offsets = [0, 112], sizes = [5, 16], strides = [1, 1]} : vector<5x192xbf16> to vector<5x16xbf16>
    %70 = vector.extract_strided_slice %3 {offsets = [0, 176], sizes = [5, 16], strides = [1, 1]} : vector<5x192xbf16> to vector<5x16xbf16>
    %cst_20 = arith.constant dense<0.000000e+00> : vector<5x5xf32>
    %71 = tpu.matmul %68, %69, %cst_20 {dimension_numbers = #tpu.dot_dimension_numbers<[1], [1], [0], [0], [0, 0, 1, 0], [], []>} : vector<5x16xbf16>, vector<5x16xbf16>, vector<5x5xf32> -> vector<5x5xf32>
    %cst_21 = arith.constant dense<0xFF800000> : vector<5xf32>
    %72 = vector.multi_reduction <maximumf>, %71, %cst_21 [1] : vector<5x5xf32> to vector<5xf32>
    %73 = vector.shape_cast %72 : vector<5xf32> to vector<5x1xf32>
    %74 = vector.broadcast %73 : vector<5x1xf32> to vector<5x5xf32>
    %75 = arith.subf %71, %74 : vector<5x5xf32>
    %76 = math.exp %75 : vector<5x5xf32>
    %cst_22 = arith.constant dense<0.000000e+00> : vector<5xf32>
    %77 = vector.multi_reduction <add>, %76, %cst_22 [1] : vector<5x5xf32> to vector<5xf32>
    %78 = vector.shape_cast %77 : vector<5xf32> to vector<5x1xf32>
    %79 = tpu.reciprocal %78 {approx = true} : vector<5x1xf32> -> vector<5x1xf32>
    %80 = arith.truncf %76 : vector<5x5xf32> to vector<5x5xbf16>
    %cst_23 = arith.constant dense<0.000000e+00> : vector<5x16xf32>
    %81 = tpu.matmul %80, %70, %cst_23 {dimension_numbers = #tpu.dot_dimension_numbers<[1], [0], [0], [1], [0, 0, 1, 1], [], []>} : vector<5x5xbf16>, vector<5x16xbf16>, vector<5x16xf32> -> vector<5x16xf32>
    %82 = vector.broadcast %79 : vector<5x1xf32> to vector<5x16xf32>
    %83 = arith.mulf %81, %82 : vector<5x16xf32>
    %84 = tpu.concatenate %23, %43, %63, %83 in 1 : vector<5x16xf32>, vector<5x16xf32>, vector<5x16xf32>, vector<5x16xf32> -> vector<5x64xf32>
    %85 = arith.truncf %84 : vector<5x64xf32> to vector<5x64xbf16>
    %c0_24 = arith.constant 0 : index
    %c0_25 = arith.constant 0 : index
    %c0_26 = arith.constant 0 : index
    %86 = vector.load %arg4[%c0_24, %c0_25, %c0_26] : memref<1x5x64xbf16, #tpu.memory_space<vmem>>, vector<1x5x64xbf16>
    %87 = vector.shape_cast %86 : vector<1x5x64xbf16> to vector<5x64xbf16>
    %88 = vector.shape_cast %85 : vector<5x64xbf16> to vector<1x5x64xbf16>
    tpu.vector_store %arg4[%c0_24, %c0_25, %c0_26], %88 {strides = array<i32>} : memref<1x5x64xbf16, #tpu.memory_space<vmem>>, vector<1x5x64xbf16>,
    return
  }
  func.func @transform_0(%arg0: i32, %arg1: i32) -> (i32, i32, i32) {
    %c0_i32 = arith.constant 0 : i32
    %c0_i32_0 = arith.constant 0 : i32
    return %arg0, %arg1, %c0_i32 : i32, i32, i32
  }
  func.func @transform_1(%arg0: i32, %arg1: i32) -> (i32, i32, i32) {
    %c0_i32 = arith.constant 0 : i32
    %c0_i32_0 = arith.constant 0 : i32
    %c0_i32_1 = arith.constant 0 : i32
    return %arg0, %c0_i32, %c0_i32_0 : i32, i32, i32
  }
  func.func @transform_2(%arg0: i32, %arg1: i32) -> (i32, i32, i32) {
    %c0_i32 = arith.constant 0 : i32
    %c0_i32_0 = arith.constant 0 : i32
    return %arg0, %arg1, %c0_i32 : i32, i32, i32
  }
}

module attributes {stable_mosaic.version = 11 : i64} {
  func.func @_mlp_kernel(%arg0: i32, %arg1: i32, %arg2: memref<10x64xbf16, #tpu.memory_space<vmem>>, %arg3: memref<1x64xf32, #tpu.memory_space<vmem>>, %arg4: memref<1x64xf32, #tpu.memory_space<vmem>>, %arg5: memref<64x256xbf16, #tpu.memory_space<vmem>>, %arg6: memref<1x256xf32, #tpu.memory_space<vmem>>, %arg7: memref<256x64xbf16, #tpu.memory_space<vmem>>, %arg8: memref<1x64xf32, #tpu.memory_space<vmem>>, %arg9: memref<10x64xbf16, #tpu.memory_space<vmem>>, %arg10: memref<10x64xf32, #tpu.memory_space<vmem>>) attributes {dimension_semantics = [#tpu.dimension_semantics<parallel>, #tpu.dimension_semantics<arbitrary>], iteration_bounds = array<i64: 1, 1>, scalar_prefetch = 0 : i64, scratch_operands = 1 : i64, tpu.core_type = #tpu.core_type<tc>, window_params = [{transform_indices = @transform_0, window_bounds = array<i64: 10, 64>}, {pipeline_mode = #tpu.pipeline_mode<synchronous>, transform_indices = @transform_1, window_bounds = array<i64: 1, 64>}, {pipeline_mode = #tpu.pipeline_mode<synchronous>, transform_indices = @transform_2, window_bounds = array<i64: 1, 64>}, {transform_indices = @transform_3, window_bounds = array<i64: 64, 256>}, {transform_indices = @transform_4, window_bounds = array<i64: 1, 256>}, {transform_indices = @transform_5, window_bounds = array<i64: 256, 64>}, {pipeline_mode = #tpu.pipeline_mode<synchronous>, transform_indices = @transform_6, window_bounds = array<i64: 1, 64>}, {transform_indices = @transform_7, window_bounds = array<i64: 10, 64>}]} {
    %c0_i32 = arith.constant 0 : i32
    %0 = arith.cmpi eq, %arg1, %c0_i32 : i32
    %1 = arith.extui %0 : i1 to i32
    %c0_i32_0 = arith.constant 0 : i32
    %2 = arith.cmpi ne, %1, %c0_i32_0 : i32
    scf.if %2 {
      %cst_26 = arith.constant 0.000000e+00 : f32
      %50 = vector.broadcast %cst_26 : f32 to vector<10x64xf32>
      %c0_27 = arith.constant 0 : index
      %c0_28 = arith.constant 0 : index
      %51 = vector.load %arg10[%c0_27, %c0_28] : memref<10x64xf32, #tpu.memory_space<vmem>>, vector<10x64xf32>
      tpu.vector_store %arg10[%c0_27, %c0_28], %50 {strides = array<i32>} : memref<10x64xf32, #tpu.memory_space<vmem>>, vector<10x64xf32>,
    } else {
    }
    %c0 = arith.constant 0 : index
    %c0_1 = arith.constant 0 : index
    %3 = vector.load %arg2[%c0, %c0_1] : memref<10x64xbf16, #tpu.memory_space<vmem>>, vector<10x64xbf16>
    %4 = arith.extf %3 : vector<10x64xbf16> to vector<10x64xf32>
    %c0_2 = arith.constant 0 : index
    %c0_3 = arith.constant 0 : index
    %5 = vector.load %arg3[%c0_2, %c0_3] : memref<1x64xf32, #tpu.memory_space<vmem>>, vector<1x64xf32>
    %c0_4 = arith.constant 0 : index
    %c0_5 = arith.constant 0 : index
    %6 = vector.load %arg4[%c0_4, %c0_5] : memref<1x64xf32, #tpu.memory_space<vmem>>, vector<1x64xf32>
    %cst = arith.constant dense<0.000000e+00> : vector<10xf32>
    %7 = vector.multi_reduction <add>, %4, %cst [1] : vector<10x64xf32> to vector<10xf32>
    %8 = vector.shape_cast %7 : vector<10xf32> to vector<10x1xf32>
    %cst_6 = arith.constant 6.400000e+01 : f32
    %9 = vector.broadcast %cst_6 : f32 to vector<10x1xf32>
    %10 = arith.divf %8, %9 : vector<10x1xf32>
    %11 = vector.broadcast %10 : vector<10x1xf32> to vector<10x64xf32>
    %12 = arith.subf %4, %11 : vector<10x64xf32>
    %13 = arith.mulf %12, %12 : vector<10x64xf32>
    %cst_7 = arith.constant dense<0.000000e+00> : vector<10xf32>
    %14 = vector.multi_reduction <add>, %13, %cst_7 [1] : vector<10x64xf32> to vector<10xf32>
    %15 = vector.shape_cast %14 : vector<10xf32> to vector<10x1xf32>
    %cst_8 = arith.constant 6.400000e+01 : f32
    %16 = vector.broadcast %cst_8 : f32 to vector<10x1xf32>
    %17 = arith.divf %15, %16 : vector<10x1xf32>
    %cst_9 = arith.constant 9.99999974E-6 : f32
    %18 = vector.broadcast %cst_9 : f32 to vector<10x1xf32>
    %19 = arith.addf %17, %18 : vector<10x1xf32>
    %20 = math.rsqrt %19 : vector<10x1xf32>
    %21 = vector.broadcast %20 : vector<10x1xf32> to vector<10x64xf32>
    %22 = arith.mulf %12, %21 : vector<10x64xf32>
    %23 = vector.broadcast %5 : vector<1x64xf32> to vector<10x64xf32>
    %24 = arith.mulf %22, %23 : vector<10x64xf32>
    %25 = vector.broadcast %6 : vector<1x64xf32> to vector<10x64xf32>
    %26 = arith.addf %24, %25 : vector<10x64xf32>
    %27 = arith.truncf %26 : vector<10x64xf32> to vector<10x64xbf16>
    %c0_10 = arith.constant 0 : index
    %c0_11 = arith.constant 0 : index
    %28 = vector.load %arg5[%c0_10, %c0_11] : memref<64x256xbf16, #tpu.memory_space<vmem>>, vector<64x256xbf16>
    %cst_12 = arith.constant dense<0.000000e+00> : vector<10x256xf32>
    %29 = tpu.matmul %27, %28, %cst_12 {dimension_numbers = #tpu.dot_dimension_numbers<[1], [0], [0], [1], [0, 0, 1, 1], [], []>} : vector<10x64xbf16>, vector<64x256xbf16>, vector<10x256xf32> -> vector<10x256xf32>
    %c0_13 = arith.constant 0 : index
    %c0_14 = arith.constant 0 : index
    %30 = vector.load %arg6[%c0_13, %c0_14] : memref<1x256xf32, #tpu.memory_space<vmem>>, vector<1x256xf32>
    %31 = vector.broadcast %30 : vector<1x256xf32> to vector<10x256xf32>
    %32 = arith.addf %29, %31 : vector<10x256xf32>
    %cst_15 = arith.constant 1.702000e+00 : f32
    %33 = vector.broadcast %cst_15 : f32 to vector<10x256xf32>
    %34 = arith.mulf %33, %32 : vector<10x256xf32>
    %35 = arith.negf %34 : vector<10x256xf32>
    %36 = math.exp %35 : vector<10x256xf32>
    %cst_16 = arith.constant 1.000000e+00 : f32
    %37 = vector.broadcast %cst_16 : f32 to vector<10x256xf32>
    %38 = arith.addf %37, %36 : vector<10x256xf32>
    %39 = arith.divf %37, %38 : vector<10x256xf32>
    %40 = arith.mulf %32, %39 : vector<10x256xf32>
    %c0_17 = arith.constant 0 : index
    %c0_18 = arith.constant 0 : index
    %41 = vector.load %arg10[%c0_17, %c0_18] : memref<10x64xf32, #tpu.memory_space<vmem>>, vector<10x64xf32>
    %42 = arith.truncf %40 : vector<10x256xf32> to vector<10x256xbf16>
    %c0_19 = arith.constant 0 : index
    %c0_20 = arith.constant 0 : index
    %43 = vector.load %arg7[%c0_19, %c0_20] : memref<256x64xbf16, #tpu.memory_space<vmem>>, vector<256x64xbf16>
    %cst_21 = arith.constant dense<0.000000e+00> : vector<10x64xf32>
    %44 = tpu.matmul %42, %43, %cst_21 {dimension_numbers = #tpu.dot_dimension_numbers<[1], [0], [0], [1], [0, 0, 1, 1], [], []>} : vector<10x256xbf16>, vector<256x64xbf16>, vector<10x64xf32> -> vector<10x64xf32>
    %45 = arith.addf %41, %44 : vector<10x64xf32>
    %c0_22 = arith.constant 0 : index
    %c0_23 = arith.constant 0 : index
    %46 = vector.load %arg10[%c0_22, %c0_23] : memref<10x64xf32, #tpu.memory_space<vmem>>, vector<10x64xf32>
    tpu.vector_store %arg10[%c0_22, %c0_23], %45 {strides = array<i32>} : memref<10x64xf32, #tpu.memory_space<vmem>>, vector<10x64xf32>,
    %c0_i32_24 = arith.constant 0 : i32
    %47 = arith.cmpi eq, %arg1, %c0_i32_24 : i32
    %48 = arith.extui %47 : i1 to i32
    %c0_i32_25 = arith.constant 0 : i32
    %49 = arith.cmpi ne, %48, %c0_i32_25 : i32
    scf.if %49 {
      %c0_26 = arith.constant 0 : index
      %c0_27 = arith.constant 0 : index
      %50 = vector.load %arg10[%c0_26, %c0_27] : memref<10x64xf32, #tpu.memory_space<vmem>>, vector<10x64xf32>
      %c0_28 = arith.constant 0 : index
      %c0_29 = arith.constant 0 : index
      %51 = vector.load %arg8[%c0_28, %c0_29] : memref<1x64xf32, #tpu.memory_space<vmem>>, vector<1x64xf32>
      %52 = vector.broadcast %51 : vector<1x64xf32> to vector<10x64xf32>
      %53 = arith.addf %50, %52 : vector<10x64xf32>
      %54 = arith.truncf %53 : vector<10x64xf32> to vector<10x64xbf16>
      %c0_30 = arith.constant 0 : index
      %c0_31 = arith.constant 0 : index
      %55 = vector.load %arg9[%c0_30, %c0_31] : memref<10x64xbf16, #tpu.memory_space<vmem>>, vector<10x64xbf16>
      tpu.vector_store %arg9[%c0_30, %c0_31], %54 {strides = array<i32>} : memref<10x64xbf16, #tpu.memory_space<vmem>>, vector<10x64xbf16>,
    } else {
    }
    return
  }
  func.func @transform_0(%arg0: i32, %arg1: i32) -> (i32, i32) {
    %c0_i32 = arith.constant 0 : i32
    %c0_i32_0 = arith.constant 0 : i32
    return %arg0, %c0_i32 : i32, i32
  }
  func.func @transform_1(%arg0: i32, %arg1: i32) -> (i32, i32) {
    %c0_i32 = arith.constant 0 : i32
    %c0_i32_0 = arith.constant 0 : i32
    %c0_i32_1 = arith.constant 0 : i32
    return %c0_i32, %c0_i32_0 : i32, i32
  }
  func.func @transform_2(%arg0: i32, %arg1: i32) -> (i32, i32) {
    %c0_i32 = arith.constant 0 : i32
    %c0_i32_0 = arith.constant 0 : i32
    %c0_i32_1 = arith.constant 0 : i32
    return %c0_i32, %c0_i32_0 : i32, i32
  }
  func.func @transform_3(%arg0: i32, %arg1: i32) -> (i32, i32) {
    %c0_i32 = arith.constant 0 : i32
    %c0_i32_0 = arith.constant 0 : i32
    return %c0_i32, %arg1 : i32, i32
  }
  func.func @transform_4(%arg0: i32, %arg1: i32) -> (i32, i32) {
    %c0_i32 = arith.constant 0 : i32
    %c0_i32_0 = arith.constant 0 : i32
    return %c0_i32, %arg1 : i32, i32
  }
  func.func @transform_5(%arg0: i32, %arg1: i32) -> (i32, i32) {
    %c0_i32 = arith.constant 0 : i32
    %c0_i32_0 = arith.constant 0 : i32
    return %arg1, %c0_i32 : i32, i32
  }
  func.func @transform_6(%arg0: i32, %arg1: i32) -> (i32, i32) {
    %c0_i32 = arith.constant 0 : i32
    %c0_i32_0 = arith.constant 0 : i32
    %c0_i32_1 = arith.constant 0 : i32
    return %c0_i32, %c0_i32_0 : i32, i32
  }
  func.func @transform_7(%arg0: i32, %arg1: i32) -> (i32, i32) {
    %c0_i32 = arith.constant 0 : i32
    %c0_i32_0 = arith.constant 0 : i32
    return %arg0, %c0_i32 : i32, i32
  }
}

module attributes {stable_mosaic.version = 11 : i64} {
  func.func @_linear_kernel(%arg0: i32, %arg1: i32, %arg2: memref<10x64xbf16, #tpu.memory_space<vmem>>, %arg3: memref<64x64xbf16, #tpu.memory_space<vmem>>, %arg4: memref<1x64xf32, #tpu.memory_space<vmem>>, %arg5: memref<10x64xbf16, #tpu.memory_space<vmem>>) attributes {dimension_semantics = [#tpu.dimension_semantics<parallel>, #tpu.dimension_semantics<parallel>], iteration_bounds = array<i64: 1, 1>, scalar_prefetch = 0 : i64, scratch_operands = 0 : i64, tpu.core_type = #tpu.core_type<tc>, window_params = [{transform_indices = @transform_0, window_bounds = array<i64: 10, 64>}, {transform_indices = @transform_1, window_bounds = array<i64: 64, 64>}, {transform_indices = @transform_2, window_bounds = array<i64: 1, 64>}, {transform_indices = @transform_3, window_bounds = array<i64: 10, 64>}]} {
    %c0 = arith.constant 0 : index
    %c0_0 = arith.constant 0 : index
    %0 = vector.load %arg2[%c0, %c0_0] : memref<10x64xbf16, #tpu.memory_space<vmem>>, vector<10x64xbf16>
    %1 = arith.extf %0 : vector<10x64xbf16> to vector<10x64xf32>
    %2 = arith.truncf %1 : vector<10x64xf32> to vector<10x64xbf16>
    %c0_1 = arith.constant 0 : index
    %c0_2 = arith.constant 0 : index
    %3 = vector.load %arg3[%c0_1, %c0_2] : memref<64x64xbf16, #tpu.memory_space<vmem>>, vector<64x64xbf16>
    %cst = arith.constant dense<0.000000e+00> : vector<10x64xf32>
    %4 = tpu.matmul %2, %3, %cst {dimension_numbers = #tpu.dot_dimension_numbers<[1], [0], [0], [1], [0, 0, 1, 1], [], []>} : vector<10x64xbf16>, vector<64x64xbf16>, vector<10x64xf32> -> vector<10x64xf32>
    %c0_3 = arith.constant 0 : index
    %c0_4 = arith.constant 0 : index
    %5 = vector.load %arg4[%c0_3, %c0_4] : memref<1x64xf32, #tpu.memory_space<vmem>>, vector<1x64xf32>
    %6 = vector.broadcast %5 : vector<1x64xf32> to vector<10x64xf32>
    %7 = arith.addf %4, %6 : vector<10x64xf32>
    %8 = arith.truncf %7 : vector<10x64xf32> to vector<10x64xbf16>
    %c0_5 = arith.constant 0 : index
    %c0_6 = arith.constant 0 : index
    %9 = vector.load %arg5[%c0_5, %c0_6] : memref<10x64xbf16, #tpu.memory_space<vmem>>, vector<10x64xbf16>
    tpu.vector_store %arg5[%c0_5, %c0_6], %8 {strides = array<i32>} : memref<10x64xbf16, #tpu.memory_space<vmem>>, vector<10x64xbf16>,
    return
  }
  func.func @transform_0(%arg0: i32, %arg1: i32) -> (i32, i32) {
    %c0_i32 = arith.constant 0 : i32
    %c0_i32_0 = arith.constant 0 : i32
    return %arg0, %c0_i32 : i32, i32
  }
  func.func @transform_1(%arg0: i32, %arg1: i32) -> (i32, i32) {
    %c0_i32 = arith.constant 0 : i32
    %c0_i32_0 = arith.constant 0 : i32
    return %c0_i32, %arg1 : i32, i32
  }
  func.func @transform_2(%arg0: i32, %arg1: i32) -> (i32, i32) {
    %c0_i32 = arith.constant 0 : i32
    %c0_i32_0 = arith.constant 0 : i32
    return %c0_i32, %arg1 : i32, i32
  }
  func.func @transform_3(%arg0: i32, %arg1: i32) -> (i32, i32) {
    %c0_i32 = arith.constant 0 : i32
    return %arg0, %arg1 : i32, i32
  }
}

module attributes {stable_mosaic.version = 11 : i64} {
  func.func @_mlp_kernel(%arg0: i32, %arg1: i32, %arg2: memref<10x64xf32, #tpu.memory_space<vmem>>, %arg3: memref<64x4xbf16, #tpu.memory_space<vmem>>, %arg4: memref<4x64xbf16, #tpu.memory_space<vmem>>, %arg5: memref<10x64xf32, #tpu.memory_space<vmem>>, %arg6: memref<10x64xf32, #tpu.memory_space<vmem>>) attributes {dimension_semantics = [#tpu.dimension_semantics<parallel>, #tpu.dimension_semantics<arbitrary>], iteration_bounds = array<i64: 1, 1>, scalar_prefetch = 0 : i64, scratch_operands = 1 : i64, tpu.core_type = #tpu.core_type<tc>, window_params = [{transform_indices = @transform_0, window_bounds = array<i64: 10, 64>}, {transform_indices = @transform_1, window_bounds = array<i64: 64, 4>}, {transform_indices = @transform_2, window_bounds = array<i64: 4, 64>}, {transform_indices = @transform_3, window_bounds = array<i64: 10, 64>}]} {
    %c0_i32 = arith.constant 0 : i32
    %0 = arith.cmpi eq, %arg1, %c0_i32 : i32
    %1 = arith.extui %0 : i1 to i32
    %c0_i32_0 = arith.constant 0 : i32
    %2 = arith.cmpi ne, %1, %c0_i32_0 : i32
    scf.if %2 {
      %cst_14 = arith.constant 0.000000e+00 : f32
      %18 = vector.broadcast %cst_14 : f32 to vector<10x64xf32>
      %c0_15 = arith.constant 0 : index
      %c0_16 = arith.constant 0 : index
      %19 = vector.load %arg6[%c0_15, %c0_16] : memref<10x64xf32, #tpu.memory_space<vmem>>, vector<10x64xf32>
      tpu.vector_store %arg6[%c0_15, %c0_16], %18 {strides = array<i32>} : memref<10x64xf32, #tpu.memory_space<vmem>>, vector<10x64xf32>,
    } else {
    }
    %c0 = arith.constant 0 : index
    %c0_1 = arith.constant 0 : index
    %3 = vector.load %arg2[%c0, %c0_1] : memref<10x64xf32, #tpu.memory_space<vmem>>, vector<10x64xf32>
    %4 = arith.truncf %3 : vector<10x64xf32> to vector<10x64xbf16>
    %c0_2 = arith.constant 0 : index
    %c0_3 = arith.constant 0 : index
    %5 = vector.load %arg3[%c0_2, %c0_3] : memref<64x4xbf16, #tpu.memory_space<vmem>>, vector<64x4xbf16>
    %cst = arith.constant dense<0.000000e+00> : vector<10x4xf32>
    %6 = tpu.matmul %4, %5, %cst {dimension_numbers = #tpu.dot_dimension_numbers<[1], [0], [0], [1], [0, 0, 1, 1], [], []>} : vector<10x64xbf16>, vector<64x4xbf16>, vector<10x4xf32> -> vector<10x4xf32>
    %cst_4 = arith.constant 0.000000e+00 : f32
    %7 = vector.broadcast %cst_4 : f32 to vector<10x4xf32>
    %8 = arith.maximumf %6, %7 : vector<10x4xf32>
    %c0_5 = arith.constant 0 : index
    %c0_6 = arith.constant 0 : index
    %9 = vector.load %arg6[%c0_5, %c0_6] : memref<10x64xf32, #tpu.memory_space<vmem>>, vector<10x64xf32>
    %10 = arith.truncf %8 : vector<10x4xf32> to vector<10x4xbf16>
    %c0_7 = arith.constant 0 : index
    %c0_8 = arith.constant 0 : index
    %11 = vector.load %arg4[%c0_7, %c0_8] : memref<4x64xbf16, #tpu.memory_space<vmem>>, vector<4x64xbf16>
    %cst_9 = arith.constant dense<0.000000e+00> : vector<10x64xf32>
    %12 = tpu.matmul %10, %11, %cst_9 {dimension_numbers = #tpu.dot_dimension_numbers<[1], [0], [0], [1], [0, 0, 1, 1], [], []>} : vector<10x4xbf16>, vector<4x64xbf16>, vector<10x64xf32> -> vector<10x64xf32>
    %13 = arith.addf %9, %12 : vector<10x64xf32>
    %c0_10 = arith.constant 0 : index
    %c0_11 = arith.constant 0 : index
    %14 = vector.load %arg6[%c0_10, %c0_11] : memref<10x64xf32, #tpu.memory_space<vmem>>, vector<10x64xf32>
    tpu.vector_store %arg6[%c0_10, %c0_11], %13 {strides = array<i32>} : memref<10x64xf32, #tpu.memory_space<vmem>>, vector<10x64xf32>,
    %c0_i32_12 = arith.constant 0 : i32
    %15 = arith.cmpi eq, %arg1, %c0_i32_12 : i32
    %16 = arith.extui %15 : i1 to i32
    %c0_i32_13 = arith.constant 0 : i32
    %17 = arith.cmpi ne, %16, %c0_i32_13 : i32
    scf.if %17 {
      %c0_14 = arith.constant 0 : index
      %c0_15 = arith.constant 0 : index
      %18 = vector.load %arg6[%c0_14, %c0_15] : memref<10x64xf32, #tpu.memory_space<vmem>>, vector<10x64xf32>
      %c0_16 = arith.constant 0 : index
      %c0_17 = arith.constant 0 : index
      %19 = vector.load %arg5[%c0_16, %c0_17] : memref<10x64xf32, #tpu.memory_space<vmem>>, vector<10x64xf32>
      tpu.vector_store %arg5[%c0_16, %c0_17], %18 {strides = array<i32>} : memref<10x64xf32, #tpu.memory_space<vmem>>, vector<10x64xf32>,
    } else {
    }
    return
  }
  func.func @transform_0(%arg0: i32, %arg1: i32) -> (i32, i32) {
    %c0_i32 = arith.constant 0 : i32
    %c0_i32_0 = arith.constant 0 : i32
    return %arg0, %c0_i32 : i32, i32
  }
  func.func @transform_1(%arg0: i32, %arg1: i32) -> (i32, i32) {
    %c0_i32 = arith.constant 0 : i32
    %c0_i32_0 = arith.constant 0 : i32
    return %c0_i32, %arg1 : i32, i32
  }
  func.func @transform_2(%arg0: i32, %arg1: i32) -> (i32, i32) {
    %c0_i32 = arith.constant 0 : i32
    %c0_i32_0 = arith.constant 0 : i32
    return %arg1, %c0_i32 : i32, i32
  }
  func.func @transform_3(%arg0: i32, %arg1: i32) -> (i32, i32) {
    %c0_i32 = arith.constant 0 : i32
    %c0_i32_0 = arith.constant 0 : i32
    return %arg0, %c0_i32 : i32, i32
  }
}

module attributes {stable_mosaic.version = 11 : i64} {
  func.func @_mlp_kernel(%arg0: i32, %arg1: i32, %arg2: memref<5x64xf32, #tpu.memory_space<vmem>>, %arg3: memref<64x4xbf16, #tpu.memory_space<vmem>>, %arg4: memref<4x64xbf16, #tpu.memory_space<vmem>>, %arg5: memref<5x64xf32, #tpu.memory_space<vmem>>, %arg6: memref<5x64xf32, #tpu.memory_space<vmem>>) attributes {dimension_semantics = [#tpu.dimension_semantics<parallel>, #tpu.dimension_semantics<arbitrary>], iteration_bounds = array<i64: 1, 1>, scalar_prefetch = 0 : i64, scratch_operands = 1 : i64, tpu.core_type = #tpu.core_type<tc>, window_params = [{transform_indices = @transform_0, window_bounds = array<i64: 5, 64>}, {transform_indices = @transform_1, window_bounds = array<i64: 64, 4>}, {transform_indices = @transform_2, window_bounds = array<i64: 4, 64>}, {transform_indices = @transform_3, window_bounds = array<i64: 5, 64>}]} {
    %c0_i32 = arith.constant 0 : i32
    %0 = arith.cmpi eq, %arg1, %c0_i32 : i32
    %1 = arith.extui %0 : i1 to i32
    %c0_i32_0 = arith.constant 0 : i32
    %2 = arith.cmpi ne, %1, %c0_i32_0 : i32
    scf.if %2 {
      %cst_14 = arith.constant 0.000000e+00 : f32
      %18 = vector.broadcast %cst_14 : f32 to vector<5x64xf32>
      %c0_15 = arith.constant 0 : index
      %c0_16 = arith.constant 0 : index
      %19 = vector.load %arg6[%c0_15, %c0_16] : memref<5x64xf32, #tpu.memory_space<vmem>>, vector<5x64xf32>
      tpu.vector_store %arg6[%c0_15, %c0_16], %18 {strides = array<i32>} : memref<5x64xf32, #tpu.memory_space<vmem>>, vector<5x64xf32>,
    } else {
    }
    %c0 = arith.constant 0 : index
    %c0_1 = arith.constant 0 : index
    %3 = vector.load %arg2[%c0, %c0_1] : memref<5x64xf32, #tpu.memory_space<vmem>>, vector<5x64xf32>
    %4 = arith.truncf %3 : vector<5x64xf32> to vector<5x64xbf16>
    %c0_2 = arith.constant 0 : index
    %c0_3 = arith.constant 0 : index
    %5 = vector.load %arg3[%c0_2, %c0_3] : memref<64x4xbf16, #tpu.memory_space<vmem>>, vector<64x4xbf16>
    %cst = arith.constant dense<0.000000e+00> : vector<5x4xf32>
    %6 = tpu.matmul %4, %5, %cst {dimension_numbers = #tpu.dot_dimension_numbers<[1], [0], [0], [1], [0, 0, 1, 1], [], []>} : vector<5x64xbf16>, vector<64x4xbf16>, vector<5x4xf32> -> vector<5x4xf32>
    %cst_4 = arith.constant 0.000000e+00 : f32
    %7 = vector.broadcast %cst_4 : f32 to vector<5x4xf32>
    %8 = arith.maximumf %6, %7 : vector<5x4xf32>
    %c0_5 = arith.constant 0 : index
    %c0_6 = arith.constant 0 : index
    %9 = vector.load %arg6[%c0_5, %c0_6] : memref<5x64xf32, #tpu.memory_space<vmem>>, vector<5x64xf32>
    %10 = arith.truncf %8 : vector<5x4xf32> to vector<5x4xbf16>
    %c0_7 = arith.constant 0 : index
    %c0_8 = arith.constant 0 : index
    %11 = vector.load %arg4[%c0_7, %c0_8] : memref<4x64xbf16, #tpu.memory_space<vmem>>, vector<4x64xbf16>
    %cst_9 = arith.constant dense<0.000000e+00> : vector<5x64xf32>
    %12 = tpu.matmul %10, %11, %cst_9 {dimension_numbers = #tpu.dot_dimension_numbers<[1], [0], [0], [1], [0, 0, 1, 1], [], []>} : vector<5x4xbf16>, vector<4x64xbf16>, vector<5x64xf32> -> vector<5x64xf32>
    %13 = arith.addf %9, %12 : vector<5x64xf32>
    %c0_10 = arith.constant 0 : index
    %c0_11 = arith.constant 0 : index
    %14 = vector.load %arg6[%c0_10, %c0_11] : memref<5x64xf32, #tpu.memory_space<vmem>>, vector<5x64xf32>
    tpu.vector_store %arg6[%c0_10, %c0_11], %13 {strides = array<i32>} : memref<5x64xf32, #tpu.memory_space<vmem>>, vector<5x64xf32>,
    %c0_i32_12 = arith.constant 0 : i32
    %15 = arith.cmpi eq, %arg1, %c0_i32_12 : i32
    %16 = arith.extui %15 : i1 to i32
    %c0_i32_13 = arith.constant 0 : i32
    %17 = arith.cmpi ne, %16, %c0_i32_13 : i32
    scf.if %17 {
      %c0_14 = arith.constant 0 : index
      %c0_15 = arith.constant 0 : index
      %18 = vector.load %arg6[%c0_14, %c0_15] : memref<5x64xf32, #tpu.memory_space<vmem>>, vector<5x64xf32>
      %19 = arith.negf %18 : vector<5x64xf32>
      %20 = math.exp %19 : vector<5x64xf32>
      %cst_16 = arith.constant 1.000000e+00 : f32
      %21 = vector.broadcast %cst_16 : f32 to vector<5x64xf32>
      %22 = arith.addf %21, %20 : vector<5x64xf32>
      %23 = arith.divf %21, %22 : vector<5x64xf32>
      %c0_17 = arith.constant 0 : index
      %c0_18 = arith.constant 0 : index
      %24 = vector.load %arg5[%c0_17, %c0_18] : memref<5x64xf32, #tpu.memory_space<vmem>>, vector<5x64xf32>
      tpu.vector_store %arg5[%c0_17, %c0_18], %23 {strides = array<i32>} : memref<5x64xf32, #tpu.memory_space<vmem>>, vector<5x64xf32>,
    } else {
    }
    return
  }
  func.func @transform_0(%arg0: i32, %arg1: i32) -> (i32, i32) {
    %c0_i32 = arith.constant 0 : i32
    %c0_i32_0 = arith.constant 0 : i32
    return %arg0, %c0_i32 : i32, i32
  }
  func.func @transform_1(%arg0: i32, %arg1: i32) -> (i32, i32) {
    %c0_i32 = arith.constant 0 : i32
    %c0_i32_0 = arith.constant 0 : i32
    return %c0_i32, %arg1 : i32, i32
  }
  func.func @transform_2(%arg0: i32, %arg1: i32) -> (i32, i32) {
    %c0_i32 = arith.constant 0 : i32
    %c0_i32_0 = arith.constant 0 : i32
    return %arg1, %c0_i32 : i32, i32
  }
  func.func @transform_3(%arg0: i32, %arg1: i32) -> (i32, i32) {
    %c0_i32 = arith.constant 0 : i32
    %c0_i32_0 = arith.constant 0 : i32
    return %arg0, %c0_i32 : i32, i32
  }
}

module attributes {stable_mosaic.version = 11 : i64} {
  func.func @_linear_kernel(%arg0: i32, %arg1: i32, %arg2: memref<40x64xf32, #tpu.memory_space<vmem>>, %arg3: memref<64x32xbf16, #tpu.memory_space<vmem>>, %arg4: memref<40x32xf32, #tpu.memory_space<vmem>>) attributes {dimension_semantics = [#tpu.dimension_semantics<parallel>, #tpu.dimension_semantics<parallel>], iteration_bounds = array<i64: 1, 1>, scalar_prefetch = 0 : i64, scratch_operands = 0 : i64, tpu.core_type = #tpu.core_type<tc>, window_params = [{transform_indices = @transform_0, window_bounds = array<i64: 40, 64>}, {transform_indices = @transform_1, window_bounds = array<i64: 64, 32>}, {transform_indices = @transform_2, window_bounds = array<i64: 40, 32>}]} {
    %c0 = arith.constant 0 : index
    %c0_0 = arith.constant 0 : index
    %0 = vector.load %arg2[%c0, %c0_0] : memref<40x64xf32, #tpu.memory_space<vmem>>, vector<40x64xf32>
    %1 = arith.truncf %0 : vector<40x64xf32> to vector<40x64xbf16>
    %c0_1 = arith.constant 0 : index
    %c0_2 = arith.constant 0 : index
    %2 = vector.load %arg3[%c0_1, %c0_2] : memref<64x32xbf16, #tpu.memory_space<vmem>>, vector<64x32xbf16>
    %cst = arith.constant dense<0.000000e+00> : vector<40x32xf32>
    %3 = tpu.matmul %1, %2, %cst {dimension_numbers = #tpu.dot_dimension_numbers<[1], [0], [0], [1], [0, 0, 1, 1], [], []>} : vector<40x64xbf16>, vector<64x32xbf16>, vector<40x32xf32> -> vector<40x32xf32>
    %cst_3 = arith.constant 0.000000e+00 : f32
    %4 = vector.broadcast %cst_3 : f32 to vector<40x32xf32>
    %5 = arith.cmpf oge, %3, %4 : vector<40x32xf32>
    %cst_4 = arith.constant 0.00999999977 : f32
    %6 = vector.broadcast %cst_4 : f32 to vector<40x32xf32>
    %7 = arith.mulf %6, %3 : vector<40x32xf32>
    %8 = arith.select %5, %3, %7 : vector<40x32xi1>, vector<40x32xf32>
    %c0_5 = arith.constant 0 : index
    %c0_6 = arith.constant 0 : index
    %9 = vector.load %arg4[%c0_5, %c0_6] : memref<40x32xf32, #tpu.memory_space<vmem>>, vector<40x32xf32>
    tpu.vector_store %arg4[%c0_5, %c0_6], %8 {strides = array<i32>} : memref<40x32xf32, #tpu.memory_space<vmem>>, vector<40x32xf32>,
    return
  }
  func.func @transform_0(%arg0: i32, %arg1: i32) -> (i32, i32) {
    %c0_i32 = arith.constant 0 : i32
    %c0_i32_0 = arith.constant 0 : i32
    return %arg0, %c0_i32 : i32, i32
  }
  func.func @transform_1(%arg0: i32, %arg1: i32) -> (i32, i32) {
    %c0_i32 = arith.constant 0 : i32
    %c0_i32_0 = arith.constant 0 : i32
    return %c0_i32, %arg1 : i32, i32
  }
  func.func @transform_2(%arg0: i32, %arg1: i32) -> (i32, i32) {
    %c0_i32 = arith.constant 0 : i32
    return %arg0, %arg1 : i32, i32
  }
}

module attributes {stable_mosaic.version = 11 : i64} {
  func.func @_linear_kernel(%arg0: i32, %arg1: i32, %arg2: memref<10x32xf32, #tpu.memory_space<vmem>>, %arg3: memref<32x64xbf16, #tpu.memory_space<vmem>>, %arg4: memref<10x64xf32, #tpu.memory_space<vmem>>) attributes {dimension_semantics = [#tpu.dimension_semantics<parallel>, #tpu.dimension_semantics<parallel>], iteration_bounds = array<i64: 1, 1>, scalar_prefetch = 0 : i64, scratch_operands = 0 : i64, tpu.core_type = #tpu.core_type<tc>, window_params = [{transform_indices = @transform_0, window_bounds = array<i64: 10, 32>}, {transform_indices = @transform_1, window_bounds = array<i64: 32, 64>}, {transform_indices = @transform_2, window_bounds = array<i64: 10, 64>}]} {
    %c0 = arith.constant 0 : index
    %c0_0 = arith.constant 0 : index
    %0 = vector.load %arg2[%c0, %c0_0] : memref<10x32xf32, #tpu.memory_space<vmem>>, vector<10x32xf32>
    %1 = arith.truncf %0 : vector<10x32xf32> to vector<10x32xbf16>
    %c0_1 = arith.constant 0 : index
    %c0_2 = arith.constant 0 : index
    %2 = vector.load %arg3[%c0_1, %c0_2] : memref<32x64xbf16, #tpu.memory_space<vmem>>, vector<32x64xbf16>
    %cst = arith.constant dense<0.000000e+00> : vector<10x64xf32>
    %3 = tpu.matmul %1, %2, %cst {dimension_numbers = #tpu.dot_dimension_numbers<[1], [0], [0], [1], [0, 0, 1, 1], [], []>} : vector<10x32xbf16>, vector<32x64xbf16>, vector<10x64xf32> -> vector<10x64xf32>
    %cst_3 = arith.constant 0.000000e+00 : f32
    %4 = vector.broadcast %cst_3 : f32 to vector<10x64xf32>
    %5 = arith.cmpf oge, %3, %4 : vector<10x64xf32>
    %cst_4 = arith.constant 0.00999999977 : f32
    %6 = vector.broadcast %cst_4 : f32 to vector<10x64xf32>
    %7 = arith.mulf %6, %3 : vector<10x64xf32>
    %8 = arith.select %5, %3, %7 : vector<10x64xi1>, vector<10x64xf32>
    %c0_5 = arith.constant 0 : index
    %c0_6 = arith.constant 0 : index
    %9 = vector.load %arg4[%c0_5, %c0_6] : memref<10x64xf32, #tpu.memory_space<vmem>>, vector<10x64xf32>
    tpu.vector_store %arg4[%c0_5, %c0_6], %8 {strides = array<i32>} : memref<10x64xf32, #tpu.memory_space<vmem>>, vector<10x64xf32>,
    return
  }
  func.func @transform_0(%arg0: i32, %arg1: i32) -> (i32, i32) {
    %c0_i32 = arith.constant 0 : i32
    %c0_i32_0 = arith.constant 0 : i32
    return %arg0, %c0_i32 : i32, i32
  }
  func.func @transform_1(%arg0: i32, %arg1: i32) -> (i32, i32) {
    %c0_i32 = arith.constant 0 : i32
    %c0_i32_0 = arith.constant 0 : i32
    return %c0_i32, %arg1 : i32, i32
  }
  func.func @transform_2(%arg0: i32, %arg1: i32) -> (i32, i32) {
    %c0_i32 = arith.constant 0 : i32
    return %arg0, %arg1 : i32, i32
  }
}

module attributes {stable_mosaic.version = 11 : i64} {
  func.func @_linear_kernel(%arg0: i32, %arg1: i32, %arg2: memref<2x64xbf16, #tpu.memory_space<vmem>>, %arg3: memref<1x64xf32, #tpu.memory_space<vmem>>, %arg4: memref<1x64xf32, #tpu.memory_space<vmem>>, %arg5: memref<64x32xbf16, #tpu.memory_space<vmem>>, %arg6: memref<2x32xf32, #tpu.memory_space<vmem>>) attributes {dimension_semantics = [#tpu.dimension_semantics<parallel>, #tpu.dimension_semantics<parallel>], iteration_bounds = array<i64: 1, 1>, scalar_prefetch = 0 : i64, scratch_operands = 0 : i64, tpu.core_type = #tpu.core_type<tc>, window_params = [{transform_indices = @transform_0, window_bounds = array<i64: 2, 64>}, {pipeline_mode = #tpu.pipeline_mode<synchronous>, transform_indices = @transform_1, window_bounds = array<i64: 1, 64>}, {pipeline_mode = #tpu.pipeline_mode<synchronous>, transform_indices = @transform_2, window_bounds = array<i64: 1, 64>}, {transform_indices = @transform_3, window_bounds = array<i64: 64, 32>}, {transform_indices = @transform_4, window_bounds = array<i64: 2, 32>}]} {
    %c0 = arith.constant 0 : index
    %c0_0 = arith.constant 0 : index
    %0 = vector.load %arg2[%c0, %c0_0] : memref<2x64xbf16, #tpu.memory_space<vmem>>, vector<2x64xbf16>
    %1 = arith.extf %0 : vector<2x64xbf16> to vector<2x64xf32>
    %c0_1 = arith.constant 0 : index
    %c0_2 = arith.constant 0 : index
    %2 = vector.load %arg3[%c0_1, %c0_2] : memref<1x64xf32, #tpu.memory_space<vmem>>, vector<1x64xf32>
    %c0_3 = arith.constant 0 : index
    %c0_4 = arith.constant 0 : index
    %3 = vector.load %arg4[%c0_3, %c0_4] : memref<1x64xf32, #tpu.memory_space<vmem>>, vector<1x64xf32>
    %cst = arith.constant dense<0.000000e+00> : vector<2xf32>
    %4 = vector.multi_reduction <add>, %1, %cst [1] : vector<2x64xf32> to vector<2xf32>
    %5 = vector.shape_cast %4 : vector<2xf32> to vector<2x1xf32>
    %cst_5 = arith.constant 6.400000e+01 : f32
    %6 = vector.broadcast %cst_5 : f32 to vector<2x1xf32>
    %7 = arith.divf %5, %6 : vector<2x1xf32>
    %8 = vector.broadcast %7 : vector<2x1xf32> to vector<2x64xf32>
    %9 = arith.subf %1, %8 : vector<2x64xf32>
    %10 = arith.mulf %9, %9 : vector<2x64xf32>
    %cst_6 = arith.constant dense<0.000000e+00> : vector<2xf32>
    %11 = vector.multi_reduction <add>, %10, %cst_6 [1] : vector<2x64xf32> to vector<2xf32>
    %12 = vector.shape_cast %11 : vector<2xf32> to vector<2x1xf32>
    %cst_7 = arith.constant 6.400000e+01 : f32
    %13 = vector.broadcast %cst_7 : f32 to vector<2x1xf32>
    %14 = arith.divf %12, %13 : vector<2x1xf32>
    %cst_8 = arith.constant 9.99999974E-6 : f32
    %15 = vector.broadcast %cst_8 : f32 to vector<2x1xf32>
    %16 = arith.addf %14, %15 : vector<2x1xf32>
    %17 = math.rsqrt %16 : vector<2x1xf32>
    %18 = vector.broadcast %17 : vector<2x1xf32> to vector<2x64xf32>
    %19 = arith.mulf %9, %18 : vector<2x64xf32>
    %20 = vector.broadcast %2 : vector<1x64xf32> to vector<2x64xf32>
    %21 = arith.mulf %19, %20 : vector<2x64xf32>
    %22 = vector.broadcast %3 : vector<1x64xf32> to vector<2x64xf32>
    %23 = arith.addf %21, %22 : vector<2x64xf32>
    %24 = arith.truncf %23 : vector<2x64xf32> to vector<2x64xbf16>
    %c0_9 = arith.constant 0 : index
    %c0_10 = arith.constant 0 : index
    %25 = vector.load %arg5[%c0_9, %c0_10] : memref<64x32xbf16, #tpu.memory_space<vmem>>, vector<64x32xbf16>
    %cst_11 = arith.constant dense<0.000000e+00> : vector<2x32xf32>
    %26 = tpu.matmul %24, %25, %cst_11 {dimension_numbers = #tpu.dot_dimension_numbers<[1], [0], [0], [1], [0, 0, 1, 1], [], []>} : vector<2x64xbf16>, vector<64x32xbf16>, vector<2x32xf32> -> vector<2x32xf32>
    %c0_12 = arith.constant 0 : index
    %c0_13 = arith.constant 0 : index
    %27 = vector.load %arg6[%c0_12, %c0_13] : memref<2x32xf32, #tpu.memory_space<vmem>>, vector<2x32xf32>
    tpu.vector_store %arg6[%c0_12, %c0_13], %26 {strides = array<i32>} : memref<2x32xf32, #tpu.memory_space<vmem>>, vector<2x32xf32>,
    return
  }
  func.func @transform_0(%arg0: i32, %arg1: i32) -> (i32, i32) {
    %c0_i32 = arith.constant 0 : i32
    %c0_i32_0 = arith.constant 0 : i32
    return %arg0, %c0_i32 : i32, i32
  }
  func.func @transform_1(%arg0: i32, %arg1: i32) -> (i32, i32) {
    %c0_i32 = arith.constant 0 : i32
    %c0_i32_0 = arith.constant 0 : i32
    %c0_i32_1 = arith.constant 0 : i32
    return %c0_i32, %c0_i32_0 : i32, i32
  }
  func.func @transform_2(%arg0: i32, %arg1: i32) -> (i32, i32) {
    %c0_i32 = arith.constant 0 : i32
    %c0_i32_0 = arith.constant 0 : i32
    %c0_i32_1 = arith.constant 0 : i32
    return %c0_i32, %c0_i32_0 : i32, i32
  }
  func.func @transform_3(%arg0: i32, %arg1: i32) -> (i32, i32) {
    %c0_i32 = arith.constant 0 : i32
    %c0_i32_0 = arith.constant 0 : i32
    return %c0_i32, %arg1 : i32, i32
  }
  func.func @transform_4(%arg0: i32, %arg1: i32) -> (i32, i32) {
    %c0_i32 = arith.constant 0 : i32
    return %arg0, %arg1 : i32, i32
  }
}

</mosaic_0001>

<bundles_post_ra>
// kernel: _lambda_.36
= control target key start
LH: loop header
LB: loop body
LE: loop exit
PB: predicated region body
PF: predicated region fallthrough
CT: control target
= control target key end

     0   :  { %vm18_vm0 = vcmask 523264   ;;  %vm22_vm1 = vcmask 517120   ;;  %vm71_vm2 = vcmask 519168   ;;  %vm73_vm3 = vcmask 516096   ;;  %s127_s0 = inlined_call_operand.vmem [shape: f32[10,64], index: 0, kind: input, shape index: {}]   ;;  %s128_s1 = inlined_call_operand.vmem [shape: f32[1,64], index: 1, kind: input, shape index: {}]   ;;  %s129_s2 = inlined_call_operand.vmem [shape: f32[1,64], index: 2, kind: input, shape index: {}]   ;;  %s130_s3 = inlined_call_operand.vmem [shape: bf16[10,64], index: 3, kind: output, shape index: {}]  }
   0x1   :  { %v14_v0 = vld [vmem:[%s127_s0] sm:$0xff]  ;;  %v15_v1 = vld [vmem:[%s127_s0 + $0x8] sm:$0x3] }
   0x2   :  { %v19_v2 = vsel %vm18_vm0, %v14_v0, 0.0  ;;  %v23_v3 = vsel %vm22_vm1, %v15_v1, 0.0  ;;  %v79_v21 = vld [vmem:[%s128_s1] ss:$0 sm:$0xff] }
   0x3   :  { %20 = vadd.xlane.f32.xlu0 %v19_v2  ;;  %v80_v23 = vld [vmem:[%s129_s2] ss:$0 sm:$0xff] }
   0x7   :  { %24 = vadd.xlane.f32.xlu0 %v23_v3 }
  0x8c   :  { %v21_v4 = vpop.xlane.xlu0 %20 }
  0x8d   :  { %v27_v5 = vmul.f32 0.015625, %v21_v4 }
  0x8f   :  { %v29_v6 = vsub.f32 %v14_v0, %v27_v5 }
  0x90   :  { %v25_v7 = vpop.xlane.xlu0 %24 }
  0x91   :  { %v28_v8 = vmul.f32 0.015625, %v25_v7  ;;  %v31_v9 = vmul.f32 %v29_v6, %v29_v6 }
  0x93   :  { %v30_v10 = vsub.f32 %v15_v1, %v28_v8  ;;  %v33_v11 = vsel %vm18_vm0, %v31_v9, 0.0 }
  0x94   :  { %34 = vadd.xlane.f32.xlu1 %v33_v11 }
  0x95   :  { %v32_v12 = vmul.f32 %v30_v10, %v30_v10 }
  0x97   :  { %v36_v13 = vsel %vm22_vm1, %v32_v12, 0.0 }
  0x98   :  { %37 = vadd.xlane.f32.xlu1 %v36_v13 }
 0x11d   :  { %v35_v14 = vpop.xlane.xlu1 %34 }
 0x11e   :  { %v39_v15 = vmul.f32 0.015625, %v35_v14 }
 0x120   :  { %v41_v16 = vadd.f32 1e-05, %v39_v15 }
 0x121   :  { %v38_v17 = vpop.xlane.xlu1 %37 }
 0x122   :  { %85 = vrsqrt.f32 %v41_v16  ;;  %v40_v18 = vmul.f32 0.015625, %v38_v17 }
 0x124   :  { %v42_v19 = vadd.f32 1e-05, %v40_v18 }
 0x126   :  { %87 = vrsqrt.f32 %v42_v19 }
 0x12f   :  { %v86_v20 = vpop.eup %85 }
 0x130   :  { %v45_v22 = vmul.f32 %v86_v20, %v29_v6 }
 0x132   :  { %v53_v24 = vmul.f32 %v79_v21, %v45_v22 }
 0x133   :  { %v88_v25 = vpop.eup %87 }
 0x134   :  { %v61_v26 = vadd.f32 %v80_v23, %v53_v24  ;;  %v46_v27 = vmul.f32 %v88_v25, %v30_v10 }
 0x136   :  { %v83_v28 = vpack.c.bf16 %v61_v26, %v61_v26  ;;  %v54_v29 = vmul.f32 %v79_v21, %v46_v27 }
 0x138   :  { %72 = vst.msk [vmem:[%s130_s3] sm:$0xf] %vm71_vm2, %v83_v28  ;;  %v62_v30 = vadd.f32 %v80_v23, %v54_v29 }
 0x13a   :  { %v84_v31 = vpack.c.bf16 %v62_v30, %v62_v30 }
 0x13c   :  { %74 = vst.msk [vmem:[%s130_s3 + $0x4] sm:$0x1] %vm73_vm3, %v84_v31 }

// kernel: _lambda_.35
= control target key start
LH: loop header
LB: loop body
LE: loop exit
PB: predicated region body
PF: predicated region fallthrough
CT: control target
= control target key end

     0   :  { %v187_v0 = vmov 0   ;;  %vm112_vm0 = vcmask 523264   ;;  %s250_s1 = inlined_call_operand.vmem [shape: bf16[192,64], index: 1, kind: input, shape index: {}]   ;;  %s251_s0 = inlined_call_operand.vmem [shape: f32[8,192], index: 0, kind: input, shape index: {}]   ;;  %s252_s2 = inlined_call_operand.vmem [shape: f32[8,64], index: 2, kind: output, shape index: {}]  }
   0x1   :  { %116 = vmatprep.subr.bf16.mxu0 %v187_v0  ;;  %v175_v1 = vld [vmem:[%s250_s1 + $0x38] sm:$0xff]   ;;  %v176_v2 = vld [vmem:[%s250_s1 + $0x30] sm:$0xff]   ;;  %v177_v3 = vld [vmem:[%s250_s1 + $0x28] sm:$0xff]  }
   0x2   :  { %117 = vmatpush1.bf16.msra.mxu0 %v175_v1  ;;  %v178_v4 = vld [vmem:[%s250_s1 + $0x20] sm:$0xff]   ;;  %v13_v5 = vld [vmem:[%s251_s0 + $0x8] sm:$0xff]  ;;  %v179_v7 = vld [vmem:[%s250_s1 + $0x18] sm:$0xff]  }
   0x3   :  { %118 = vmatprep.subr.bf16.mxu0 %v187_v0  ;;  %v15_v6 = vpack.c.bf16 %v13_v5, %v13_v5  ;;  %v180_v8 = vld [vmem:[%s250_s1 + $0x10] sm:$0xff]   ;;  %v181_v9 = vld [vmem:[%s250_s1 + $0x8] sm:$0xff]   ;;  %v182_v10 = vld [vmem:[%s250_s1] sm:$0xff]  }
   0x4   :  { %v183_v11 = vld [vmem:[%s250_s1 + $0x58] sm:$0xff]   ;;  %v184_v12 = vld [vmem:[%s250_s1 + $0x50] sm:$0xff]   ;;  %v185_v13 = vld [vmem:[%s250_s1 + $0x48] sm:$0xff]  }
   0x5   :  { %173 = vmatprep.mubr.msk.bf16.mxu0 %vm112_vm0, %v15_v6  ;;  %v186_v14 = vld [vmem:[%s250_s1 + $0x40] sm:$0xff]  }
   0x6   :  { %119 = vmatpush1.bf16.msra.mxu0 %v176_v2  ;;  %v12_v15 = vld [vmem:[%s251_s0] sm:$0xff] }
   0x7   :  { %120 = vmatprep.subr.bf16.mxu0 %v187_v0  ;;  %v14_v16 = vpack.c.bf16 %v12_v15, %v12_v15 }
   0xa   :  { %121 = vmatpush1.bf16.msra.mxu0 %v177_v3 }
   0xb   :  { %122 = vmatprep.subr.bf16.mxu0 %v187_v0 }
   0xe   :  { %123 = vmatpush1.bf16.msra.mxu0 %v178_v4 }
   0xf   :  { %124 = vmatprep.subr.bf16.mxu0 %v187_v0 }
  0x12   :  { %125 = vmatpush1.bf16.msra.mxu0 %v179_v7 }
  0x13   :  { %126 = vmatprep.subr.bf16.mxu0 %v187_v0 }
  0x16   :  { %127 = vmatpush1.bf16.msra.mxu0 %v180_v8 }
  0x17   :  { %128 = vmatprep.subr.bf16.mxu0 %v187_v0 }
  0x1a   :  { %129 = vmatpush1.bf16.msra.mxu0 %v181_v9 }
  0x1b   :  { %130 = vmatprep.subr.bf16.mxu0 %v187_v0 }
  0x1e   :  { %131 = vmatpush1.bf16.msra.mxu0 %v182_v10 }
  0x1f   :  { %140 = vmatprep.subr.bf16.mxu0 %v187_v0 }
  0x22   :  { %141 = vmatpush2.bf16.msra.mxu0 %v183_v11 }
  0x23   :  { %142 = vmatprep.subr.bf16.mxu0 %v187_v0 }
  0x26   :  { %143 = vmatpush2.bf16.msra.mxu0 %v184_v12 }
  0x27   :  { %144 = vmatprep.subr.bf16.mxu0 %v187_v0 }
  0x2a   :  { %145 = vmatpush2.bf16.msra.mxu0 %v185_v13 }
  0x2b   :  { %146 = vmatprep.subr.bf16.mxu0 %v187_v0 }
  0x2e   :  { %147 = vmatpush2.bf16.msra.mxu0 %v186_v14 }
  0x31   :  { %149 = vmatmul.mubr.bf16.vlgmr.msra.gmra.mxu0 %v14_v16 }
  0xf1   :  { %v150_v17 = vpop.f32.mrf.mxu0 }
  0xf2   :  { %156 = vst.msk [vmem:[%s252_s2] sm:$0xff] %vm112_vm0, %v150_v17 }
  0xf3   :  { %v152_v18 = vpop.f32.mrf.mxu0 }
  0xf5   :  { %v153_v19 = vpop.f32.mrf.mxu0 }
  0xf7   :  { %v154_v20 = vpop.f32.mrf.mxu0 }

// kernel: _lambda_.37
= control target key start
LH: loop header
LB: loop body
LE: loop exit
PB: predicated region body
PF: predicated region fallthrough
CT: control target
= control target key end

     0   :  { %vm27_vm0 = vcmask 523264   ;;  %vm31_vm1 = vcmask 517120   ;;  %v235_v17 = vmov 0   ;;  %v83_v42 = vlaneseq  ;;  %s314_s0 = inlined_call_operand.vmem [shape: bf16[10,64], index: 0, kind: input, shape index: {}]   ;;  %s315_s3 = inlined_call_operand.vmem [shape: bf16[64,192], index: 3, kind: input, shape index: {}]   ;;  %s316_s1 = inlined_call_operand.vmem [shape: f32[1,64], index: 1, kind: input, shape index: {}]   ;;  %s317_s2 = inlined_call_operand.vmem [shape: f32[1,64], index: 2, kind: input, shape index: {}]   ;;  %s318_s4 = inlined_call_operand.vmem [shape: f32[1,192], index: 4, kind: input, shape index: {}]   ;;  %s319_s5 = inlined_call_operand.vmem [shape: bf16[10,192], index: 5, kind: output, shape index: {}]  }
   0x1   :  { %v21_v0 = vld [vmem:[%s314_s0] sm:$0xf]  ;;  %v22_v1 = vld [vmem:[%s314_s0 + $0x4] sm:$0x1]  ;;  %v219_v16 = vld [vmem:[%s315_s3 + $0x34] ss:$8 sps:$4 sm:$0xff]   ;;  %168 = vmatprep.mubr.bf16.mxu0 %v235_v17 }
   0x2   :  { %v23_v2 = vunpack.c.l.bf16 %v21_v0  ;;  %v24_v3 = vunpack.c.l.bf16 %v22_v1  ;;  %v221_v18 = vld [vmem:[%s315_s3 + $0x30] ss:$8 sps:$4 sm:$0xff]   ;;  %144 = vmatprep.subr.bf16.mxu0 %v219_v16  ;;  %v222_v19 = vld [vmem:[%s315_s3 + $0x24] ss:$8 sps:$4 sm:$0xff]   ;;  %v224_v20 = vld [vmem:[%s315_s3 + $0x20] ss:$8 sps:$4 sm:$0xff]  }
   0x3   :  { %145 = vmatpush1.bf16.msra.mxu0 %v221_v18  ;;  %v225_v21 = vld [vmem:[%s315_s3 + $0x14] ss:$8 sps:$4 sm:$0xff]   ;;  %v227_v22 = vld [vmem:[%s315_s3 + $0x10] ss:$8 sps:$4 sm:$0xff]   ;;  %v228_v23 = vld [vmem:[%s315_s3 + $0x4] ss:$8 sps:$4 sm:$0xff]  }
   0x4   :  { %v28_v4 = vsel %vm27_vm0, %v23_v2, 0.0  ;;  %v32_v5 = vsel %vm31_vm1, %v24_v3, 0.0  ;;  %146 = vmatprep.subr.bf16.mxu0 %v222_v19  ;;  %v230_v24 = vld [vmem:[%s315_s3] ss:$8 sps:$4 sm:$0xff]   ;;  %v84_v43 = vshrl.u32 %v83_v42, 7  ;;  %vm191_vm2 = vcmask 1043456  }
   0x5   :  { %29 = vadd.xlane.f32.xlu0 %v28_v4  ;;  %v203_v33 = vld [vmem:[%s316_s1] ss:$0 sm:$0xff]  ;;  %vm192_vm3 = vcmask 523268   ;;  %vm195_vm5 = vcmask 1040384   ;;  %vm196_vm6 = vcmask 520196  }
   0x6   :  { %v204_v37 = vld [vmem:[%s317_s2] ss:$0 sm:$0xff]  ;;  %v85_v44 = vsub.s32 0, %v84_v43  ;;  %v89_v45 = vsub.s32 1, %v84_v43  ;;  %vm193_vm4 = vmor %vm192_vm3, %vm191_vm2 }
   0x7   :  { %147 = vmatpush1.bf16.msra.mxu0 %v224_v20  ;;  %v81_v46 = vld [vmem:[%s318_s4] sm:$0x3]  ;;  %vm197_vm7 = vmor %vm196_vm6, %vm195_vm5 }
   0x8   :  { %148 = vmatprep.subr.bf16.mxu0 %v225_v21  ;;  %v86_v47 = vrot.slane %v81_v46, %v85_v44  ;;  %v90_v48 = vrot.slane %v81_v46, %v89_v45 }
   0x9   :  { %33 = vadd.xlane.f32.xlu0 %v32_v5 }
   0xb   :  { %149 = vmatpush1.bf16.msra.mxu0 %v227_v22 }
   0xc   :  { %150 = vmatprep.subr.bf16.mxu0 %v228_v23 }
   0xf   :  { %151 = vmatpush1.bf16.msra.mxu0 %v230_v24 }
  0x8e   :  { %v30_v6 = vpop.xlane.xlu0 %29 }
  0x8f   :  { %v36_v7 = vmul.f32 0.015625, %v30_v6 }
  0x91   :  { %v38_v8 = vsub.f32 %v23_v2, %v36_v7 }
  0x92   :  { %v34_v9 = vpop.xlane.xlu0 %33 }
  0x93   :  { %v37_v10 = vmul.f32 0.015625, %v34_v9  ;;  %v40_v11 = vmul.f32 %v38_v8, %v38_v8 }
  0x95   :  { %v39_v12 = vsub.f32 %v24_v3, %v37_v10  ;;  %v42_v13 = vsel %vm27_vm0, %v40_v11, 0.0 }
  0x96   :  { %43 = vadd.xlane.f32.xlu1 %v42_v13 }
  0x97   :  { %v41_v14 = vmul.f32 %v39_v12, %v39_v12 }
  0x99   :  { %v45_v15 = vsel %vm31_vm1, %v41_v14, 0.0 }
  0x9a   :  { %46 = vadd.xlane.f32.xlu1 %v45_v15 }
 0x11f   :  { %v44_v25 = vpop.xlane.xlu1 %43 }
 0x120   :  { %v48_v26 = vmul.f32 0.015625, %v44_v25 }
 0x122   :  { %v50_v27 = vadd.f32 1e-05, %v48_v26 }
 0x123   :  { %v47_v28 = vpop.xlane.xlu1 %46 }
 0x124   :  { %231 = vrsqrt.f32 %v50_v27  ;;  %v49_v29 = vmul.f32 0.015625, %v47_v28 }
 0x126   :  { %v51_v30 = vadd.f32 1e-05, %v49_v29 }
 0x128   :  { %233 = vrsqrt.f32 %v51_v30 }
 0x131   :  { %v232_v31 = vpop.eup %231 }
 0x132   :  { %v54_v32 = vmul.f32 %v232_v31, %v38_v8 }
 0x134   :  { %v62_v36 = vmul.f32 %v203_v33, %v54_v32 }
 0x135   :  { %v234_v34 = vpop.eup %233 }
 0x136   :  { %v55_v35 = vmul.f32 %v234_v34, %v39_v12  ;;  %v70_v39 = vadd.f32 %v204_v37, %v62_v36 }
 0x138   :  { %v63_v38 = vmul.f32 %v203_v33, %v55_v35 }
 0x13a   :  { %v71_v40 = vadd.f32 %v204_v37, %v63_v38 }
 0x13c   :  { %v72_v41 = vpack.c.bf16 %v71_v40, %v70_v39 }
 0x13e   :  { %213 = vmatmul.mubr.msk.bf16.vlgmr.msra.gmra.mxu0 %vm27_vm0, %v72_v41 }
 0x1fe   :  { %v170_v49 = vpop.f32.mrf.mxu0 }
 0x1ff   :  { %v171_v51 = vadd.f32 %v170_v49, %v86_v47 }
 0x200   :  { %v172_v50 = vpop.f32.mrf.mxu0 }
 0x201   :  { %v173_v52 = vadd.f32 %v172_v50, %v90_v48 }
 0x202   :  { %v174_v53 = vpop.f32.mrf.mxu0 }
 0x203   :  { %v216_v54 = vpack.c.bf16 %v173_v52, %v171_v51  ;;  %v175_v56 = vadd.f32 %v174_v53, %v86_v47 }
 0x204   :  { %v176_v55 = vpop.f32.mrf.mxu0 }
 0x205   :  { %194 = vst.msk [vmem:[%s319_s5] sm:$0xff] %vm193_vm4, %v216_v54  ;;  %v177_v57 = vadd.f32 %v176_v55, %v90_v48 }
 0x207   :  { %v217_v58 = vpack.c.bf16 %v177_v57, %v175_v56 }
 0x209   :  { %198 = vst.msk [vmem:[%s319_s5 + $0x8] sm:$0x11] %vm197_vm7, %v217_v58 }

// kernel: _lambda_.38
= control target key start
LH: loop header
LB: loop body
LE: loop exit
PB: predicated region body
PF: predicated region fallthrough
CT: control target
= control target key end

     0   :  { %s956_s9 = smov 0   ;;  %s958_s10 = smov 0   ;;  %s1071_s0 = inlined_call_operand.vmem [shape: bf16[2,5,192], index: 0, kind: input, shape index: {}, may-alias: {0,1}]   ;;  %s1072_s1 = inlined_call_operand.vmem [shape: bf16[2,5,192], index: 1, kind: input, shape index: {}, may-alias: {0,1}]   ;;  %s1073_s2 = inlined_call_operand.vmem [shape: bf16[2,5,64], index: 2, kind: output, shape index: {}]  }
   0x1   :  { %s960_s11 = smov 0  }
   0x2 LB: > { %s24_s12 = sadd.s32 1, %s925_s10  ;;  %p771_p0 = scmp.ge.s32.totalorder %s929_s11, 1  ;;  %s929_s11 = sphi %s960_s11, %s12_s11   ;;  %s925_s10 = sphi %s958_s10, %s1075_s10   ;;  %s921_s9 = sphi %s956_s9, %s1074_s9  }
   0x3   : > { %p26_p1 = scmp.ge.s32.totalorder %s24_s12, 2  ;;  %p142_p2 = scmp.lt.s32.totalorder %s929_s11, 3 }
   0x5   : > { %s1077_s12 = smov (%p26_p1, %s24_s12), 0  ;;  %p143_p3 = pnand %p771_p0, %p142_p2 }
   0x6   : > { %p175_p4 = scmp.lt.s32.totalorder (!%p143_p3), %s921_s9, 1  ;;  %s933_s17 = smov (!%p143_p3), 64  }
   0x7   : > { %146 = sbr.rel (%p143_p3) target bundleno = 1184 (0x4a0), region = 28  ;;  %s934_s21 = smov (!%p143_p3), 48  }
   0x8   : > { %s935_s22 = smov (!%p143_p3), 112   ;;  %s936_s23 = smov (!%p143_p3), 32  }
   0x9   : > { %s937_s24 = smov (!%p143_p3), 96   ;;  %s938_s25 = smov (!%p143_p3), 16  }
   0xa   : > { %s939_s26 = smov (!%p143_p3), 80  }
   0xc   : > { %v931_v0 = vmov 0.0   ;;  %vm932_vm0 = vmmov 0   ;;  %s1079_s9 = smov (!%p175_p4, %s921_s9), 1  ;;  %vm207_vm1 = vcmask 130048   ;;  %vm254_vm2 = vcmask 36864  }
   0xd   : > { %807 = vmatprep.subr.bf16.mxu0 %v931_v0  ;;  %809 = vmatprep.mubr.msk.bf16.mxu0 %vm932_vm0, %v931_v0  ;;  %s789_s13 = sshll.u32 %s1079_s9, 3  ;;  %vm272_vm3 = vcmask 1041408   ;;  %vm273_vm4 = vcmask 1042432   ;;  %v940_v15 = vmov 65535   ;;  %vm268_vm5 = vcmask 39936   ;;  %s776_s27 = sshll.u32 %s1079_s9, 2 }
   0xe   : > { %813 = vmatprep.subr.bf16.mxu1 %v931_v0  ;;  %815 = vmatprep.mubr.msk.bf16.mxu1 %vm932_vm0, %v931_v0  ;;  %s188_s16 = scalar_lea.vmem %s1072_s1, %s789_s13  ;;  %s183_s20 = scalar_lea.vmem %s1071_s0, %s789_s13  ;;  %v274_v16 = vsel %vm272_vm3, 4294967295, %v940_v15  ;;  %vm664_vm6 = vcmask 261120   ;;  %vm666_vm7 = vcmask 392192   ;;  %vm669_vm8 = vcmask 518144  }
   0xf   : > { %v198_v1 = vld [vmem:[%s188_s16] sm:$0x77]  ;;  %v1002_v17 = vsel %vm273_vm4, %v274_v16, 0  ;;  %s195_s30 = scalar_lea.vmem %s1073_s2, %s776_s27  ;;  %vm670_vm9 = vsmask.f32 2304 }
  0x10   : > { %v777_v2 = vcombine.low %v198_v1, %v198_v1  ;;  %v197_v3 = vld [vmem:[%s183_s20] sm:$0x7]  ;;  %v1000_v14 = vcombine.high %v198_v1, %v198_v1  ;;  %vm671_vm10 = vmand %vm669_vm8, %vm670_vm9 }
  0x11   : > { %v199_v4 = vunpack.c.l.bf16 %v197_v3 }
  0x12   : > { %205 = vrot.lane.b32.xlu0 %v777_v2, %s933_s17  ;;  %323 = vrot.lane.b32.xlu1 %v777_v2, %s934_s21  ;;  %v277_v18 = vand.u32 %v1000_v14, %v1002_v17 }
  0x13   : > { %v200_v7 = vmul.f32 0.25, %v199_v4 }
  0x14   : > { %814 = vmatpush3.bf16.msra.mxu1 %v277_v18 }
  0x15   : > { %v201_v8 = vpack.c.bf16 %v200_v7, %v200_v7  ;;  %819 = vmatprep.subr.bf16.mxu1 %v931_v0 }
  0x17   : > { %321 = vrot.lane.b32.xlu1 %v201_v8, %s935_s22 }
  0x1b   : > { %433 = vrot.lane.b32.xlu1 %v777_v2, %s936_s23 }
  0x1f   : > { %431 = vrot.lane.b32.xlu1 %v201_v8, %s937_s24 }
  0x23   : > { %543 = vrot.lane.b32.xlu1 %v777_v2, %s938_s25 }
  0x27   : > { %541 = vrot.lane.b32.xlu1 %v201_v8, %s939_s26 }
  0x84   : > { %v206_v5 = vpop.permute.xlu0 %205  ;;  %v324_v22 = vpop.permute.xlu1 %323 }
  0x85   : > { %v212_v6 = vsel %vm207_vm1, %v206_v5, 0  ;;  %v329_v25 = vsel %vm207_vm1, %v324_v22, 0 }
  0x86   : > { %808 = vmatpush3.bf16.xpose.msra.mxu0 %v212_v6 }
  0x87   : > { %825 = vmatprep.subr.bf16.mxu0 %v931_v0 }
  0x89   : > { %v322_v23 = vpop.permute.xlu1 %321 }
  0x8d   : > { %810 = vmatmul.mubr.msk.bf16.vlgmr.msra.gmra.mxu0 %vm207_vm1, %v201_v8  ;;  %v434_v27 = vpop.permute.xlu1 %433 }
  0x8e   : > { %827 = vmatprep.mubr.msk.bf16.mxu0 %vm932_vm0, %v931_v0  ;;  %v439_v29 = vsel %vm207_vm1, %v434_v27, 0 }
  0x91   : > { %v432_v28 = vpop.permute.xlu1 %431 }
  0x95   : > { %v544_v30 = vpop.permute.xlu1 %543 }
  0x96   : > { %v549_v31 = vsel %vm207_vm1, %v544_v30, 0 }
  0x99   : > { %v542_v32 = vpop.permute.xlu1 %541 }
 0x14d   : > { %v248_v9 = vpop.f32.mrf.mxu0 }
 0x14e   : > { %v255_v10 = vsel %vm254_vm2, %v248_v9, -inf }
 0x14f   : > { %256 = vmax.xlane.f32.xlu0 %v255_v10  ;;  %v811_v11 = vpop.f32.mrf.mxu0 }
 0x151   : > { %v251_v12 = vpop.f32.mrf.mxu0 }
 0x153   : > { %v812_v13 = vpop.f32.mrf.mxu0 }
 0x165   : > { %382 = vrot.lane.b32.xlu0 %v1000_v14, %s935_s22 }
 0x1d8   : > { %v257_v19 = vpop.xlane.xlu0 %256 }
 0x1d9   : > { %v258_v20 = vsub.f32 %v248_v9, %v257_v19 }
 0x1db   : > { %v259_v21 = vmul.f32 1.442695, %v258_v20 }
 0x1dc   : > { %v383_v33 = vpop.permute.xlu0 %382 }
 0x1dd   : > { %891 = vpow2.f32 %v259_v21  ;;  %v388_v34 = vand.u32 %v383_v33, %v1002_v17 }
 0x1df   : > { %826 = vmatpush3.bf16.msra.mxu0 %v388_v34 }
 0x1e0   : > { %837 = vmatprep.subr.bf16.mxu0 %v931_v0 }
 0x1ea   : > { %v1008_v24 = vpop.eup %891 }
 0x1eb   : > { %v265_v26 = vpack.c.bf16 %v1008_v24, %v1008_v24  ;;  %v261_v13 = vsel %vm254_vm2, %v1008_v24, 0.0 }
 0x1ed   : > { %816 = vmatmul.mubr.msk.bf16.vlgmr.msra.gmra.mxu1 %vm268_vm5, %v265_v26 }
 0x1ee   : > { %820 = vmatpush3.bf16.xpose.msra.mxu1 %v329_v25  ;;  %821 = vmatprep.mubr.msk.bf16.mxu1 %vm932_vm0, %v931_v0 }
 0x1ef   : > { %831 = vmatprep.subr.bf16.mxu1 %v931_v0 }
 0x1f5   : > { %822 = vmatmul.mubr.msk.bf16.vlgmr.msra.gmra.mxu1 %vm207_vm1, %v322_v23 }
 0x1f6   : > { %832 = vmatpush3.bf16.xpose.msra.mxu1 %v439_v29  ;;  %833 = vmatprep.mubr.msk.bf16.mxu1 %vm932_vm0, %v931_v0 }
 0x1f7   : > { %843 = vmatprep.subr.bf16.mxu1 %v931_v0 }
 0x1fd   : > { %834 = vmatmul.mubr.msk.bf16.vlgmr.msra.gmra.mxu1 %vm207_vm1, %v432_v28 }
 0x1fe   : > { %844 = vmatpush3.bf16.xpose.msra.mxu1 %v549_v31  ;;  %845 = vmatprep.mubr.msk.bf16.mxu1 %vm932_vm0, %v931_v0 }
 0x205   : > { %846 = vmatmul.mubr.msk.bf16.vlgmr.msra.gmra.mxu1 %vm207_vm1, %v542_v32 }
 0x2ad   : > { %v1029_v35 = vpop.f32.mrf.mxu1 }
 0x2af   : > { %v817_v36 = vpop.f32.mrf.mxu1 }
 0x2b1   : > { %v316_v37 = vpop.f32.mrf.mxu1 }
 0x2b3   : > { %v818_v38 = vpop.f32.mrf.mxu1 }
 0x2b5   : > { %v365_v39 = vpop.f32.mrf.mxu1 }
 0x2b6   : > { %v371_v40 = vsel %vm254_vm2, %v365_v39, -inf }
 0x2b7   : > { %372 = vmax.xlane.f32.xlu1 %v371_v40  ;;  %v823_v41 = vpop.f32.mrf.mxu1 }
 0x2b9   : > { %v368_v42 = vpop.f32.mrf.mxu1 }
 0x2bb   : > { %v824_v43 = vpop.f32.mrf.mxu1 }
 0x2bc   : > { %v672_v43 = vld [vmem:[%s195_s30] sm:$0x7] }
 0x2bd   : > { %v475_v44 = vpop.f32.mrf.mxu1 }
 0x2be   : > { %v481_v45 = vsel %vm254_vm2, %v475_v44, -inf }
 0x2bf   : > { %482 = vmax.xlane.f32.xlu0 %v481_v45  ;;  %v835_v46 = vpop.f32.mrf.mxu1 }
 0x2c1   : > { %v478_v47 = vpop.f32.mrf.mxu1 }
 0x2c3   : > { %v836_v48 = vpop.f32.mrf.mxu1 }
 0x2c5   : > { %v585_v49 = vpop.f32.mrf.mxu1 }
 0x2c6   : > { %v591_v50 = vsel %vm254_vm2, %v585_v49, -inf }
 0x2c7   : > { %592 = vmax.xlane.f32.xlu0 %v591_v50  ;;  %v847_v51 = vpop.f32.mrf.mxu1 }
 0x2c8   : > { %492 = vrot.lane.b32.xlu1 %v1000_v14, %s937_s24 }
 0x2c9   : > { %v588_v52 = vpop.f32.mrf.mxu1 }
 0x2cb   : > { %v848_v53 = vpop.f32.mrf.mxu1 }
 0x2dd   : > { %602 = vrot.lane.b32.xlu0 %v1000_v14, %s939_s26 }
 0x340   : > { %v373_v54 = vpop.xlane.xlu1 %372 }
 0x341   : > { %v374_v55 = vsub.f32 %v365_v39, %v373_v54 }
 0x343   : > { %v375_v56 = vmul.f32 1.442695, %v374_v55 }
 0x344   : > { %v493_v60 = vpop.permute.xlu1 %492 }
 0x345   : > { %893 = vpow2.f32 %v375_v56  ;;  %v498_v1 = vand.u32 %v493_v60, %v1002_v17 }
 0x348   : > { %v483_v57 = vpop.xlane.xlu0 %482 }
 0x349   : > { %v484_v58 = vsub.f32 %v475_v44, %v483_v57 }
 0x34b   : > { %v485_v59 = vmul.f32 1.442695, %v484_v58 }
 0x34d   : > { %895 = vpow2.f32 %v485_v59 }
 0x350   : > { %v593_v61 = vpop.xlane.xlu0 %592 }
 0x351   : > { %v594_v62 = vsub.f32 %v585_v49, %v593_v61 }
 0x352   : > { %v894_v63 = vpop.eup %893 }
 0x353   : > { %v595_v2 = vmul.f32 1.442695, %v594_v62  ;;  %v377_v3 = vsel %vm254_vm2, %v894_v63, 0.0  ;;  %v381_v4 = vpack.c.bf16 %v894_v63, %v894_v63 }
 0x354   : > { %378 = vadd.xlane.f32.xlu0 %v377_v3  ;;  %v603_v5 = vpop.permute.xlu0 %602 }
 0x355   : > { %897 = vpow2.f32 %v595_v2  ;;  %828 = vmatmul.mubr.msk.bf16.vlgmr.msra.gmra.mxu0 %vm268_vm5, %v381_v4  ;;  %v608_v7 = vand.u32 %v603_v5, %v1002_v17 }
 0x356   : > { %838 = vmatpush3.bf16.msra.mxu0 %v498_v1  ;;  %839 = vmatprep.mubr.msk.bf16.mxu0 %vm932_vm0, %v931_v0 }
 0x357   : > { %849 = vmatprep.subr.bf16.mxu0 %v931_v0 }
 0x35a   : > { %v896_v6 = vpop.eup %895 }
 0x35b   : > { %v487_v8 = vsel %vm254_vm2, %v896_v6, 0.0  ;;  %v491_v9 = vpack.c.bf16 %v896_v6, %v896_v6 }
 0x35c   : > { %488 = vadd.xlane.f32.xlu1 %v487_v8 }
 0x35d   : > { %840 = vmatmul.mubr.msk.bf16.vlgmr.msra.gmra.mxu0 %vm268_vm5, %v491_v9 }
 0x35e   : > { %850 = vmatpush3.bf16.msra.mxu0 %v608_v7  ;;  %851 = vmatprep.mubr.msk.bf16.mxu0 %vm932_vm0, %v931_v0 }
 0x362   : > { %v898_v10 = vpop.eup %897 }
 0x363   : > { %v597_v11 = vsel %vm254_vm2, %v898_v10, 0.0  ;;  %v601_v12 = vpack.c.bf16 %v898_v10, %v898_v10 }
 0x364   : > { %598 = vadd.xlane.f32.xlu0 %v597_v11 }
 0x365   : > { %852 = vmatmul.mubr.msk.bf16.vlgmr.msra.gmra.mxu0 %vm268_vm5, %v601_v12 }
 0x368   : > { %262 = vadd.xlane.f32.xlu0 %v261_v13 }
 0x3dd   : > { %v379_v14 = vpop.xlane.xlu0 %378 }
 0x3de   : > { %899 = vrcp.f32 %v379_v14 }
 0x3e5   : > { %v489_v15 = vpop.xlane.xlu1 %488 }
 0x3e6   : > { %901 = vrcp.f32 %v489_v15 }
 0x3eb   : > { %v900_v16 = vpop.eup %899 }
 0x3ed   : > { %v599_v17 = vpop.xlane.xlu0 %598 }
 0x3ee   : > { %903 = vrcp.f32 %v599_v17 }
 0x3f1   : > { %v263_v34 = vpop.xlane.xlu0 %262 }
 0x3f2   : > { %905 = vrcp.f32 %v263_v34 }
 0x3f3   : > { %v902_v22 = vpop.eup %901 }
 0x3fb   : > { %v904_v28 = vpop.eup %903 }
 0x3ff   : > { %v906_v36 = vpop.eup %905 }
 0x400   : > { %v319_v38 = vmul.f32 %v906_v36, %v1029_v35 }
 0x415   : > { %v424_v18 = vpop.f32.mrf.mxu0 }
 0x416   : > { %v430_v19 = vmul.f32 %v900_v16, %v424_v18 }
 0x417   : > { %v829_v0 = vpop.f32.mrf.mxu0 }
 0x418   : > { %652 = vrot.lane.b32.xlu0 %v430_v19, %s938_s25 }
 0x419   : > { %v427_v20 = vpop.f32.mrf.mxu0 }
 0x41b   : > { %v830_v21 = vpop.f32.mrf.mxu0 }
 0x41d   : > { %v534_v23 = vpop.f32.mrf.mxu0 }
 0x41e   : > { %v540_v25 = vmul.f32 %v902_v22, %v534_v23 }
 0x41f   : > { %v841_v24 = vpop.f32.mrf.mxu0 }
 0x420   : > { %656 = vrot.lane.b32.xlu1 %v540_v25, %s936_s23 }
 0x421   : > { %v537_v26 = vpop.f32.mrf.mxu0 }
 0x423   : > { %v842_v27 = vpop.f32.mrf.mxu0 }
 0x425   : > { %v644_v29 = vpop.f32.mrf.mxu0 }
 0x426   : > { %v650_v30 = vmul.f32 %v904_v28, %v644_v29 }
 0x427   : > { %v853_v31 = vpop.f32.mrf.mxu0 }
 0x428   : > { %660 = vrot.lane.b32.xlu0 %v650_v30, %s934_s21 }
 0x429   : > { %v647_v32 = vpop.f32.mrf.mxu0 }
 0x42b   : > { %v854_v33 = vpop.f32.mrf.mxu0 }
 0x48a   : > { %v653_v37 = vpop.permute.xlu0 %652 }
 0x48b   : > { %v663_v40 = vsel %vm207_vm1, %v319_v38, %v653_v37 }
 0x492   : > { %v657_v39 = vpop.permute.xlu1 %656 }
 0x493   : > { %v665_v41 = vsel %vm664_vm6, %v663_v40, %v657_v39 }
 0x49a   : > { %v661_v42 = vpop.permute.xlu0 %660 }
 0x49b   : > { %v667_v44 = vsel %vm666_vm7, %v665_v41, %v661_v42 }
 0x49c   : > { %v668_v45 = vpack.c.bf16 %v667_v44, %v667_v44 }
 0x49e   : > { %v673_v46 = vsel %vm671_vm10, %v668_v45, %v672_v43 }
 0x49f   : > { %674 = vst [vmem:[%s195_s30] sm:$0x7] %v673_v46 }
 0x4a0 PF: > { %s12_s11 = sadd.s32 1, %s929_s11   ;;  %s1074_s9 = smov %s925_s10 }
 0x4a1   : > { %p9_p5 = scmp.ge.s32.totalorder %s12_s11, 4   ;;  %s1075_s10 = smov %s1077_s12 }
 0x4a3   :  { %11 = sbr.rel (!%p9_p5) target bundleno = 2 (0x2), region = 61 }

// kernel: _lambda_.39
= control target key start
LH: loop header
LB: loop body
LE: loop exit
PB: predicated region body
PF: predicated region fallthrough
CT: control target
= control target key end

     0   :  { %v157_v0 = vmov 0.0   ;;  %vm158_vm0 = vmmov 0   ;;  %vm61_vm1 = vcmask 523264   ;;  %vm114_vm2 = vcmask 519168   ;;  %s203_s1 = inlined_call_operand.vmem [shape: bf16[64,64], index: 1, kind: input, shape index: {}]   ;;  %s204_s0 = inlined_call_operand.vmem [shape: bf16[10,64], index: 0, kind: input, shape index: {}]   ;;  %s205_s2 = inlined_call_operand.vmem [shape: f32[1,64], index: 2, kind: input, shape index: {}]   ;;  %s206_s3 = inlined_call_operand.vmem [shape: bf16[10,64], index: 3, kind: output, shape index: {}]  }
   0x1   :  { %138 = vmatprep.subr.bf16.mxu0 %v157_v0  ;;  %v152_v1 = vld [vmem:[%s203_s1 + $0x18] sm:$0xff]   ;;  %146 = vmatprep.mubr.msk.bf16.mxu0 %vm158_vm0, %v157_v0  ;;  %v153_v2 = vld [vmem:[%s203_s1 + $0x10] sm:$0xff]   ;;  %v154_v3 = vld [vmem:[%s203_s1 + $0x8] sm:$0xff]   ;;  %vm116_vm3 = vcmask 516096  }
   0x2   :  { %139 = vmatpush3.bf16.msra.mxu0 %v152_v1  ;;  %v155_v4 = vld [vmem:[%s203_s1] sm:$0xff]  }
   0x3   :  { %140 = vmatprep.subr.bf16.mxu0 %v157_v0  ;;  %v156_v5 = vld [vmem:[%s204_s0] sm:$0x1f]  }
   0x4   :  { %v122_v6 = vld [vmem:[%s205_s2] ss:$0 sm:$0xff] }
   0x6   :  { %141 = vmatpush3.bf16.msra.mxu0 %v153_v2 }
   0x7   :  { %142 = vmatprep.subr.bf16.mxu0 %v157_v0 }
   0xa   :  { %143 = vmatpush3.bf16.msra.mxu0 %v154_v3 }
   0xb   :  { %144 = vmatprep.subr.bf16.mxu0 %v157_v0 }
   0xe   :  { %145 = vmatpush3.bf16.msra.mxu0 %v155_v4 }
  0x11   :  { %147 = vmatmul.mubr.msk.bf16.vlgmr.msra.gmra.mxu0 %vm61_vm1, %v156_v5 }
  0xd1   :  { %v99_v7 = vpop.f32.mrf.mxu0 }
  0xd2   :  { %v100_v8 = vadd.f32 %v122_v6, %v99_v7 }
  0xd3   :  { %v148_v9 = vpop.f32.mrf.mxu0 }
  0xd4   :  { %v131_v10 = vpack.c.bf16 %v100_v8, %v100_v8 }
  0xd5   :  { %v102_v11 = vpop.f32.mrf.mxu0 }
  0xd6   :  { %115 = vst.msk [vmem:[%s206_s3] sm:$0xf] %vm114_vm2, %v131_v10  ;;  %v103_v12 = vadd.f32 %v122_v6, %v102_v11 }
  0xd7   :  { %v149_v13 = vpop.f32.mrf.mxu0 }
  0xd8   :  { %v132_v14 = vpack.c.bf16 %v103_v12, %v103_v12 }
  0xda   :  { %117 = vst.msk [vmem:[%s206_s3 + $0x4] sm:$0x1] %vm116_vm3, %v132_v14 }

// kernel: _lambda_.40
= control target key start
LH: loop header
LB: loop body
LE: loop exit
PB: predicated region body
PF: predicated region fallthrough
CT: control target
= control target key end

     0   :  { %vm31_vm0 = vcmask 523264   ;;  %vm33_vm1 = vcmask 517120   ;;  %v540_v1 = vmov 0.0   ;;  %v541_v18 = vmov 0   ;;  %s687_s0 = inlined_call_operand.vmem [shape: bf16[10,64], index: 0, kind: input, shape index: {}]   ;;  %s688_s3 = inlined_call_operand.vmem [shape: bf16[64,256], index: 3, kind: input, shape index: {}]   ;;  %s689_s1 = inlined_call_operand.vmem [shape: f32[1,64], index: 1, kind: input, shape index: {}]   ;;  %s690_s2 = inlined_call_operand.vmem [shape: f32[1,64], index: 2, kind: input, shape index: {}, may-alias: {2,6}]   ;;  %s691_s5 = inlined_call_operand.vmem [shape: bf16[256,64], index: 5, kind: input, shape index: {}]   ;;  %s692_s4 = inlined_call_operand.vmem [shape: f32[1,256], index: 4, kind: input, shape index: {}]   ;;  %s693_s6 = inlined_call_operand.vmem [shape: f32[1,64], index: 6, kind: input, shape index: {}, may-alias: {2,6}]   ;;  %s694_s7 = inlined_call_operand.vmem [shape: bf16[10,64], index: 7, kind: output, shape index: {}]  }
   0x1   :  { %v35_v0 = vld [vmem:[%s687_s0] sm:$0xf]  ;;  %32 = vst.msk [vmem:[#allocation2] sm:$0xff] %vm31_vm0, %v540_v1  ;;  %v36_v2 = vld [vmem:[%s687_s0 + $0x4] sm:$0x1]  ;;  %182 = vmatprep.mubr.bf16.mxu0 %v541_v18  ;;  %v504_v43 = vld [vmem:[%s691_s5 + $0x78] sm:$0xff]   ;;  %v97_v59 = vlaneseq }
   0x2   :  { %34 = vst.msk [vmem:[#allocation2 + $0x8] sm:$0x3] %vm33_vm1, %v540_v1  ;;  %v37_v3 = vunpack.c.l.bf16 %v35_v0  ;;  %v38_v4 = vunpack.c.l.bf16 %v36_v2  ;;  %v492_v17 = vld [vmem:[%s688_s3 + $0x34] ss:$8 sps:$4 sm:$0xff]   ;;  %v494_v19 = vld [vmem:[%s688_s3 + $0x30] ss:$8 sps:$4 sm:$0xff]   ;;  %468 = vmatprep.subr.bf16.mxu1 %v504_v43 }
   0x3   :  { %158 = vmatprep.subr.bf16.mxu0 %v492_v17  ;;  %v495_v20 = vld [vmem:[%s688_s3 + $0x24] ss:$8 sps:$4 sm:$0xff]   ;;  %v497_v21 = vld [vmem:[%s688_s3 + $0x20] ss:$8 sps:$4 sm:$0xff]   ;;  %v498_v22 = vld [vmem:[%s688_s3 + $0x14] ss:$8 sps:$4 sm:$0xff]  }
   0x4   :  { %v42_v5 = vsel %vm31_vm0, %v37_v3, 0.0  ;;  %v46_v6 = vsel %vm33_vm1, %v38_v4, 0.0  ;;  %159 = vmatpush1.bf16.msra.mxu0 %v494_v19  ;;  %v500_v23 = vld [vmem:[%s688_s3 + $0x10] ss:$8 sps:$4 sm:$0xff]   ;;  %v501_v24 = vld [vmem:[%s688_s3 + $0x4] ss:$8 sps:$4 sm:$0xff]  }
   0x5   :  { %43 = vadd.xlane.f32.xlu0 %v42_v5  ;;  %160 = vmatprep.subr.bf16.mxu0 %v495_v20  ;;  %v503_v25 = vld [vmem:[%s688_s3] ss:$8 sps:$4 sm:$0xff]   ;;  %v505_v44 = vld [vmem:[%s691_s5 + $0x38] sm:$0xff]   ;;  %v506_v45 = vld [vmem:[%s691_s5 + $0x70] sm:$0xff]   ;;  %v98_v60 = vshrl.u32 %v97_v59, 7  ;;  %vm424_vm2 = vcmask 519168  }
   0x6   :  { %v432_v34 = vld [vmem:[%s689_s1] ss:$0 sm:$0xff]  ;;  %469 = vmatpush3.bf16.msra.mxu1 %v505_v44  ;;  %v507_v46 = vld [vmem:[%s691_s5 + $0x30] sm:$0xff]   ;;  %v508_v47 = vld [vmem:[%s691_s5 + $0x68] sm:$0xff]   ;;  %vm426_vm3 = vcmask 516096  }
   0x7   :  { %v433_v38 = vld [vmem:[%s690_s2] ss:$0 sm:$0xff]  ;;  %470 = vmatprep.subr.bf16.mxu1 %v506_v45  ;;  %v509_v48 = vld [vmem:[%s691_s5 + $0x28] sm:$0xff]   ;;  %v512_v51 = vld [vmem:[%s691_s5 + $0x58] sm:$0xff]   ;;  %v99_v61 = vsub.s32 0, %v98_v60  ;;  %v103_v63 = vsub.s32 1, %v98_v60 }
   0x8   :  { %161 = vmatpush1.bf16.msra.mxu0 %v497_v21  ;;  %v510_v49 = vld [vmem:[%s691_s5 + $0x60] sm:$0xff]   ;;  %v513_v52 = vld [vmem:[%s691_s5 + $0x18] sm:$0xff]   ;;  %v514_v53 = vld [vmem:[%s691_s5 + $0x50] sm:$0xff]  }
   0x9   :  { %47 = vadd.xlane.f32.xlu0 %v46_v6  ;;  %162 = vmatprep.subr.bf16.mxu0 %v498_v22  ;;  %v511_v50 = vld [vmem:[%s691_s5 + $0x20] sm:$0xff]   ;;  %v515_v54 = vld [vmem:[%s691_s5 + $0x10] sm:$0xff]   ;;  %v516_v55 = vld [vmem:[%s691_s5 + $0x48] sm:$0xff]  }
   0xa   :  { %471 = vmatpush3.bf16.msra.mxu1 %v507_v46  ;;  %v517_v56 = vld [vmem:[%s691_s5 + $0x8] sm:$0xff]   ;;  %v518_v57 = vld [vmem:[%s691_s5 + $0x40] sm:$0xff]  }
   0xb   :  { %472 = vmatprep.subr.bf16.mxu1 %v508_v47  ;;  %v519_v58 = vld [vmem:[%s691_s5] sm:$0xff]  }
   0xc   :  { %163 = vmatpush1.bf16.msra.mxu0 %v500_v23  ;;  %v95_v62 = vld [vmem:[%s692_s4] sm:$0x3] }
   0xd   :  { %164 = vmatprep.subr.bf16.mxu0 %v501_v24  ;;  %v100_v0 = vrot.slane %v95_v62, %v99_v61  ;;  %v104_v1 = vrot.slane %v95_v62, %v103_v63  ;;  %v463_v46 = vld [vmem:[%s693_s6] ss:$0 sm:$0xff] }
   0xe   :  { %473 = vmatpush3.bf16.msra.mxu1 %v509_v48 }
   0xf   :  { %474 = vmatprep.subr.bf16.mxu1 %v510_v49 }
  0x10   :  { %165 = vmatpush1.bf16.msra.mxu0 %v503_v25 }
  0x12   :  { %475 = vmatpush3.bf16.msra.mxu1 %v511_v50 }
  0x13   :  { %476 = vmatprep.subr.bf16.mxu1 %v512_v51 }
  0x16   :  { %477 = vmatpush3.bf16.msra.mxu1 %v513_v52 }
  0x17   :  { %478 = vmatprep.subr.bf16.mxu1 %v514_v53 }
  0x1a   :  { %479 = vmatpush3.bf16.msra.mxu1 %v515_v54 }
  0x1b   :  { %480 = vmatprep.subr.bf16.mxu1 %v516_v55 }
  0x1e   :  { %481 = vmatpush3.bf16.msra.mxu1 %v517_v56 }
  0x1f   :  { %482 = vmatprep.subr.bf16.mxu1 %v518_v57 }
  0x22   :  { %483 = vmatpush3.bf16.msra.mxu1 %v519_v58 }
  0x8e   :  { %v44_v7 = vpop.xlane.xlu0 %43 }
  0x8f   :  { %v50_v8 = vmul.f32 0.015625, %v44_v7 }
  0x91   :  { %v52_v9 = vsub.f32 %v37_v3, %v50_v8 }
  0x92   :  { %v48_v10 = vpop.xlane.xlu0 %47 }
  0x93   :  { %v51_v11 = vmul.f32 0.015625, %v48_v10  ;;  %v54_v12 = vmul.f32 %v52_v9, %v52_v9 }
  0x95   :  { %v53_v13 = vsub.f32 %v38_v4, %v51_v11  ;;  %v56_v14 = vsel %vm31_vm0, %v54_v12, 0.0 }
  0x96   :  { %57 = vadd.xlane.f32.xlu1 %v56_v14 }
  0x97   :  { %v55_v15 = vmul.f32 %v53_v13, %v53_v13 }
  0x99   :  { %v59_v16 = vsel %vm33_vm1, %v55_v15, 0.0 }
  0x9a   :  { %60 = vadd.xlane.f32.xlu1 %v59_v16 }
 0x11f   :  { %v58_v26 = vpop.xlane.xlu1 %57 }
 0x120   :  { %v62_v27 = vmul.f32 0.015625, %v58_v26 }
 0x122   :  { %v64_v28 = vadd.f32 1e-05, %v62_v27 }
 0x123   :  { %v61_v29 = vpop.xlane.xlu1 %60 }
 0x124   :  { %520 = vrsqrt.f32 %v64_v28  ;;  %v63_v30 = vmul.f32 0.015625, %v61_v29 }
 0x126   :  { %v65_v31 = vadd.f32 1e-05, %v63_v30 }
 0x128   :  { %522 = vrsqrt.f32 %v65_v31 }
 0x131   :  { %v521_v32 = vpop.eup %520 }
 0x132   :  { %v68_v33 = vmul.f32 %v521_v32, %v52_v9 }
 0x134   :  { %v76_v37 = vmul.f32 %v432_v34, %v68_v33 }
 0x135   :  { %v523_v35 = vpop.eup %522 }
 0x136   :  { %v69_v36 = vmul.f32 %v523_v35, %v53_v13  ;;  %v84_v40 = vadd.f32 %v433_v38, %v76_v37  ;;  %v225_v37 = vld [vmem:[#allocation2] sm:$0xff] }
 0x138   :  { %v77_v39 = vmul.f32 %v432_v34, %v69_v36 }
 0x13a   :  { %v85_v41 = vadd.f32 %v433_v38, %v77_v39 }
 0x13c   :  { %v86_v42 = vpack.c.bf16 %v85_v41, %v84_v40 }
 0x13e   :  { %442 = vmatmul.mubr.msk.bf16.vlgmr.msra.gmra.mxu0 %vm31_vm0, %v86_v42  ;;  %v226_v42 = vld [vmem:[#allocation2 + $0x8] sm:$0x3] }
 0x1fe   :  { %v184_v2 = vpop.f32.mrf.mxu0 }
 0x1ff   :  { %v185_v3 = vadd.f32 %v184_v2, %v100_v0 }
 0x200   :  { %v186_v4 = vpop.f32.mrf.mxu0 }
 0x201   :  { %v443_v5 = vmul.f32 -1.702, %v185_v3  ;;  %v187_v6 = vadd.f32 %v186_v4, %v104_v1 }
 0x202   :  { %v188_v7 = vpop.f32.mrf.mxu0 }
 0x203   :  { %v201_v8 = vmul.f32 1.442695, %v443_v5  ;;  %v444_v9 = vmul.f32 -1.702, %v187_v6  ;;  %v189_v10 = vadd.f32 %v188_v7, %v100_v0 }
 0x204   :  { %v190_v11 = vpop.f32.mrf.mxu0 }
 0x205   :  { %v203_v12 = vmul.f32 1.442695, %v444_v9  ;;  %v445_v13 = vmul.f32 -1.702, %v189_v10  ;;  %v191_v14 = vadd.f32 %v190_v11, %v104_v1  ;;  %524 = vpow2.f32 %v201_v8 }
 0x207   :  { %526 = vpow2.f32 %v203_v12  ;;  %v205_v15 = vmul.f32 1.442695, %v445_v13  ;;  %v446_v16 = vmul.f32 -1.702, %v191_v14 }
 0x209   :  { %528 = vpow2.f32 %v205_v15  ;;  %v207_v17 = vmul.f32 1.442695, %v446_v16 }
 0x20b   :  { %530 = vpow2.f32 %v207_v17 }
 0x212   :  { %v525_v18 = vpop.eup %524 }
 0x213   :  { %v209_v22 = vadd.f32 1.0, %v525_v18 }
 0x214   :  { %v527_v19 = vpop.eup %526 }
 0x215   :  { %v210_v20 = vadd.f32 1.0, %v527_v19 }
 0x216   :  { %v529_v21 = vpop.eup %528 }
 0x217   :  { %v211_v23 = vadd.f32 1.0, %v529_v21  ;;  %532 = vrcp.f32 %v210_v20 }
 0x218   :  { %v531_v24 = vpop.eup %530 }
 0x219   :  { %534 = vrcp.f32 %v211_v23  ;;  %v212_v25 = vadd.f32 1.0, %v531_v24 }
 0x21a   :  { %536 = vrcp.f32 %v209_v22 }
 0x21b   :  { %538 = vrcp.f32 %v212_v25 }
 0x224   :  { %v533_v26 = vpop.eup %532 }
 0x225   :  { %v222_v31 = vmul.f32 %v533_v26, %v187_v6 }
 0x226   :  { %v535_v27 = vpop.eup %534 }
 0x227   :  { %v537_v28 = vpop.eup %536  ;;  %v223_v30 = vmul.f32 %v535_v27, %v189_v10 }
 0x228   :  { %v539_v29 = vpop.eup %538  ;;  %v221_v33 = vmul.f32 %v537_v28, %v185_v3 }
 0x229   :  { %v224_v32 = vmul.f32 %v539_v29, %v191_v14 }
 0x22a   :  { %v227_v35 = vpack.c.bf16 %v223_v30, %v221_v33 }
 0x22b   :  { %v228_v34 = vpack.c.bf16 %v224_v32, %v222_v31 }
 0x22d   :  { %389 = vmatprep.mubr.bf16.mxu1 %v228_v34 }
 0x22e   :  { %390 = vmatmul.mubr.bf16.vlgmr.msra.gmra.mxu1 %v227_v35 }
 0x2ee   :  { %v484_v36 = vpop.f32.mrf.mxu1 }
 0x2f0   :  { %v485_v38 = vpop.f32.mrf.mxu1 }
 0x2f1   :  { %v486_v39 = vadd.f32 %v485_v38, %v484_v36 }
 0x2f2   :  { %v487_v40 = vpop.f32.mrf.mxu1 }
 0x2f3   :  { %v398_v41 = vadd.f32 %v486_v39, %v225_v37 }
 0x2f4   :  { %v488_v43 = vpop.f32.mrf.mxu1 }
 0x2f5   :  { %400 = vst.msk [vmem:[#allocation2] sm:$0xff] %vm31_vm0, %v398_v41  ;;  %v489_v44 = vadd.f32 %v488_v43, %v487_v40 }
 0x2f7   :  { %v399_v45 = vadd.f32 %v489_v44, %v226_v42 }
 0x2f9   :  { %401 = vst.msk [vmem:[#allocation2 + $0x8] sm:$0x3] %vm33_vm1, %v399_v45 }
 0x2fc   :  { %v405_v47 = vld [vmem:[#allocation2] sm:$0xff] }
 0x2fd   :  { %v414_v48 = vadd.f32 %v463_v46, %v405_v47 }
 0x2ff   :  { %v466_v49 = vpack.c.bf16 %v414_v48, %v414_v48 }
 0x300   :  { %v406_v50 = vld [vmem:[#allocation2 + $0x8] sm:$0x3] }
 0x301   :  { %425 = vst.msk [vmem:[%s694_s7] sm:$0xf] %vm424_vm2, %v466_v49  ;;  %v415_v51 = vadd.f32 %v463_v46, %v406_v50 }
 0x303   :  { %v467_v52 = vpack.c.bf16 %v415_v51, %v415_v51 }
 0x305   :  { %427 = vst.msk [vmem:[%s694_s7 + $0x4] sm:$0x1] %vm426_vm3, %v467_v52 }

// kernel: _lambda_.49
= control target key start
LH: loop header
LB: loop body
LE: loop exit
PB: predicated region body
PF: predicated region fallthrough
CT: control target
= control target key end

     0   :  { %vm19_vm0 = vcmask 523264   ;;  %v211_v0 = vmov 0.0   ;;  %vm212_vm1 = vmmov 0   ;;  %vm113_vm2 = vcmask 1041408   ;;  %s267_s1 = inlined_call_operand.vmem [shape: bf16[64,4], index: 1, kind: input, shape index: {}]   ;;  %s268_s0 = inlined_call_operand.vmem [shape: f32[10,64], index: 0, kind: input, shape index: {}]   ;;  %s269_s2 = inlined_call_operand.vmem [shape: bf16[4,64], index: 2, kind: input, shape index: {}]   ;;  %s270_s3 = inlined_call_operand.vmem [shape: f32[10,64], index: 3, kind: output, shape index: {}]  }
   0x1   :  { %187 = vmatprep.subr.bf16.mxu0 %v211_v0  ;;  %v207_v1 = vld [vmem:[%s267_s1 + $0x18] sm:$0xff]   ;;  %195 = vmatprep.mubr.msk.bf16.mxu0 %vm212_vm1, %v211_v0  ;;  %20 = vst.msk [vmem:[#allocation2] sm:$0xff] %vm19_vm0, %v211_v0  ;;  %v208_v2 = vld [vmem:[%s267_s1 + $0x10] sm:$0xff]   ;;  %v209_v3 = vld [vmem:[%s267_s1 + $0x8] sm:$0xff]   ;;  %vm109_vm3 = vcmask 31744   ;;  %vm21_vm4 = vcmask 517120  }
   0x2   :  { %199 = vmatprep.subr.bf16.mxu1 %v211_v0  ;;  %201 = vmatprep.mubr.msk.bf16.mxu1 %vm212_vm1, %v211_v0  ;;  %v210_v4 = vld [vmem:[%s267_s1] sm:$0xff]   ;;  %v24_v6 = vld [vmem:[%s268_s0 + $0x8] sm:$0x3]  ;;  %22 = vst.msk [vmem:[#allocation2 + $0x8] sm:$0x3] %vm21_vm4, %v211_v0 }
   0x3   :  { %188 = vmatpush3.bf16.msra.mxu0 %v207_v1  ;;  %v23_v5 = vld [vmem:[%s268_s0] sm:$0xff] }
   0x4   :  { %189 = vmatprep.subr.bf16.mxu0 %v211_v0  ;;  %v25_v7 = vpack.c.bf16 %v24_v6, %v23_v5  ;;  %v108_v8 = vld [vmem:[%s269_s2] sm:$0x3] }
   0x5   :  { %v115_v9 = vsel %vm113_vm2, %v108_v8, 0 }
   0x6   :  { %200 = vmatpush3.bf16.msra.mxu1 %v115_v9 }
   0x7   :  { %190 = vmatpush3.bf16.msra.mxu0 %v208_v2 }
   0x8   :  { %191 = vmatprep.subr.bf16.mxu0 %v211_v0  ;;  %v105_v17 = vld [vmem:[#allocation2] sm:$0xff] }
   0x9   :  { %v106_v21 = vld [vmem:[#allocation2 + $0x8] sm:$0x3] }
   0xb   :  { %192 = vmatpush3.bf16.msra.mxu0 %v209_v3 }
   0xc   :  { %193 = vmatprep.subr.bf16.mxu0 %v211_v0 }
   0xf   :  { %194 = vmatpush3.bf16.msra.mxu0 %v210_v4 }
  0x12   :  { %196 = vmatmul.mubr.msk.bf16.vlgmr.msra.gmra.mxu0 %vm19_vm0, %v25_v7 }
  0xd2   :  { %v96_v10 = vpop.f32.mrf.mxu0 }
  0xd3   :  { %v103_v13 = vmax.f32 %v96_v10, 0.0 }
  0xd4   :  { %v197_v11 = vpop.f32.mrf.mxu0 }
  0xd6   :  { %v99_v12 = vpop.f32.mrf.mxu0 }
  0xd7   :  { %v104_v14 = vmax.f32 %v99_v12, 0.0 }
  0xd8   :  { %v198_v15 = vpop.f32.mrf.mxu0 }
  0xd9   :  { %v107_v16 = vpack.c.bf16 %v104_v14, %v103_v13 }
  0xdb   :  { %202 = vmatmul.mubr.msk.bf16.vlgmr.msra.gmra.mxu1 %vm109_vm3, %v107_v16 }
 0x19b   :  { %v151_v18 = vpop.f32.mrf.mxu1 }
 0x19c   :  { %v158_v19 = vadd.f32 %v151_v18, %v105_v17 }
 0x19d   :  { %v203_v20 = vpop.f32.mrf.mxu1 }
 0x19e   :  { %160 = vst.msk [vmem:[#allocation2] sm:$0xff] %vm19_vm0, %v158_v19 }
 0x19f   :  { %v154_v22 = vpop.f32.mrf.mxu1 }
 0x1a0   :  { %v159_v23 = vadd.f32 %v154_v22, %v106_v21 }
 0x1a1   :  { %v204_v24 = vpop.f32.mrf.mxu1 }
 0x1a2   :  { %162 = vst.msk [vmem:[#allocation2 + $0x8] sm:$0x3] %vm21_vm4, %v159_v23 }
 0x1a5   :  { %v166_v25 = vld [vmem:[#allocation2] sm:$0xff] }
 0x1a6   :  { %168 = vst.msk [vmem:[%s270_s3] sm:$0xff] %vm19_vm0, %v166_v25 }
 0x1a9   :  { %v167_v26 = vld [vmem:[#allocation2 + $0x8] sm:$0x3] }
 0x1aa   :  { %169 = vst.msk [vmem:[%s270_s3 + $0x8] sm:$0x3] %vm21_vm4, %v167_v26 }

// kernel: _lambda_.46
= control target key start
LH: loop header
LB: loop body
LE: loop exit
PB: predicated region body
PF: predicated region fallthrough
CT: control target
= control target key end

     0   :  { %v211_v0 = vmov 0.0   ;;  %vm212_vm0 = vmmov 0   ;;  %vm55_vm1 = vcmask 523264   ;;  %vm107_vm2 = vcmask 1041408   ;;  %s257_s1 = inlined_call_operand.vmem [shape: bf16[64,4], index: 1, kind: input, shape index: {}]   ;;  %s258_s0 = inlined_call_operand.vmem [shape: f32[5,64], index: 0, kind: input, shape index: {}]   ;;  %s259_s2 = inlined_call_operand.vmem [shape: bf16[4,64], index: 2, kind: input, shape index: {}]   ;;  %s260_s3 = inlined_call_operand.vmem [shape: f32[5,64], index: 3, kind: output, shape index: {}]  }
   0x1   :  { %183 = vmatprep.subr.bf16.mxu0 %v211_v0  ;;  %v203_v1 = vld [vmem:[%s257_s1 + $0x18] sm:$0xff]   ;;  %191 = vmatprep.mubr.msk.bf16.mxu0 %vm212_vm0, %v211_v0  ;;  %v204_v2 = vld [vmem:[%s257_s1 + $0x10] sm:$0xff]   ;;  %v205_v3 = vld [vmem:[%s257_s1 + $0x8] sm:$0xff]   ;;  %vm19_vm3 = vcmask 520192   ;;  %vm103_vm4 = vcmask 31744  }
   0x2   :  { %195 = vmatprep.subr.bf16.mxu1 %v211_v0  ;;  %197 = vmatprep.mubr.msk.bf16.mxu1 %vm212_vm0, %v211_v0  ;;  %v206_v4 = vld [vmem:[%s257_s1] sm:$0xff]   ;;  %20 = vst.msk [vmem:[#allocation2] sm:$0x1f] %vm19_vm3, %v211_v0 }
   0x3   :  { %184 = vmatpush3.bf16.msra.mxu0 %v203_v1  ;;  %v21_v5 = vld [vmem:[%s258_s0] sm:$0x1f] }
   0x4   :  { %185 = vmatprep.subr.bf16.mxu0 %v211_v0  ;;  %v22_v6 = vpack.c.bf16 %v21_v5, %v21_v5  ;;  %v102_v7 = vld [vmem:[%s259_s2] sm:$0x3] }
   0x5   :  { %v109_v8 = vsel %vm107_vm2, %v102_v7, 0 }
   0x6   :  { %196 = vmatpush3.bf16.msra.mxu1 %v109_v8 }
   0x7   :  { %186 = vmatpush3.bf16.msra.mxu0 %v204_v2 }
   0x8   :  { %187 = vmatprep.subr.bf16.mxu0 %v211_v0 }
   0x9   :  { %v100_v15 = vld [vmem:[#allocation2] sm:$0x1f] }
   0xb   :  { %188 = vmatpush3.bf16.msra.mxu0 %v205_v3 }
   0xc   :  { %189 = vmatprep.subr.bf16.mxu0 %v211_v0 }
   0xf   :  { %190 = vmatpush3.bf16.msra.mxu0 %v206_v4 }
  0x12   :  { %192 = vmatmul.mubr.msk.bf16.vlgmr.msra.gmra.mxu0 %vm55_vm1, %v22_v6 }
  0xd2   :  { %v93_v9 = vpop.f32.mrf.mxu0 }
  0xd3   :  { %v99_v10 = vmax.f32 %v93_v9, 0.0 }
  0xd4   :  { %v193_v11 = vpop.f32.mrf.mxu0 }
  0xd5   :  { %v101_v12 = vpack.c.bf16 %v99_v10, %v99_v10 }
  0xd6   :  { %v96_v13 = vpop.f32.mrf.mxu0 }
  0xd7   :  { %198 = vmatmul.mubr.msk.bf16.vlgmr.msra.gmra.mxu1 %vm103_vm4, %v101_v12 }
  0xd8   :  { %v194_v14 = vpop.f32.mrf.mxu0 }
 0x197   :  { %v145_v16 = vpop.f32.mrf.mxu1 }
 0x198   :  { %v151_v17 = vadd.f32 %v145_v16, %v100_v15 }
 0x199   :  { %v199_v18 = vpop.f32.mrf.mxu1 }
 0x19a   :  { %153 = vst.msk [vmem:[#allocation2] sm:$0x1f] %vm19_vm3, %v151_v17 }
 0x19b   :  { %v148_v19 = vpop.f32.mrf.mxu1 }
 0x19d   :  { %v200_v20 = vpop.f32.mrf.mxu1 }
 0x1a1   :  { %v157_v21 = vld [vmem:[#allocation2] sm:$0x1f] }
 0x1a2   :  { %v175_v22 = vmul.f32 -1.442695, %v157_v21 }
 0x1a4   :  { %207 = vpow2.f32 %v175_v22 }
 0x1b1   :  { %v208_v23 = vpop.eup %207 }
 0x1b2   :  { %v161_v24 = vadd.f32 1.0, %v208_v23 }
 0x1b4   :  { %209 = vrcp.f32 %v161_v24 }
 0x1c1   :  { %v210_v25 = vpop.eup %209 }
 0x1c2   :  { %164 = vst.msk [vmem:[%s260_s3] sm:$0x1f] %vm19_vm3, %v210_v25 }

// kernel: _lambda_.47
= control target key start
LH: loop header
LB: loop body
LE: loop exit
PB: predicated region body
PF: predicated region fallthrough
CT: control target
= control target key end

     0   :  { %v191_v0 = vmov 0.0   ;;  %vm192_vm0 = vmmov 0   ;;  %vm52_vm1 = vcmask 523264   ;;  %vm133_vm2 = vcmask 261120   ;;  %s258_s1 = inlined_call_operand.vmem [shape: bf16[64,32], index: 1, kind: input, shape index: {}]   ;;  %s259_s0 = inlined_call_operand.vmem [shape: f32[40,64], index: 0, kind: input, shape index: {}]   ;;  %s260_s2 = inlined_call_operand.vmem [shape: f32[40,32], index: 2, kind: output, shape index: {}]  }
   0x1   :  { %157 = vmatprep.subr.bf16.mxu0 %v191_v0  ;;  %177 = vmatprep.subr.bf16.mxu1 %v191_v0  ;;  %v187_v1 = vld [vmem:[%s258_s1 + $0x18] sm:$0xff]   ;;  %v188_v2 = vld [vmem:[%s258_s1 + $0x10] sm:$0xff]   ;;  %v189_v3 = vld [vmem:[%s258_s1 + $0x8] sm:$0xff]  }
   0x2   :  { %165 = vmatprep.mubr.msk.bf16.mxu0 %vm192_vm0, %v191_v0  ;;  %169 = vmatprep.mubr.msk.bf16.mxu1 %vm192_vm0, %v191_v0  ;;  %v190_v4 = vld [vmem:[%s258_s1] sm:$0xff]   ;;  %v13_v6 = vld [vmem:[%s259_s0 + $0x8] sm:$0xff]  ;;  %v14_v7 = vld [vmem:[%s259_s0 + $0x10] sm:$0xff] }
   0x3   :  { %158 = vmatpush3.bf16.msra.mxu0 %v187_v1  ;;  %181 = vmatpush3.bf16.msra.mxu1 %v187_v1  ;;  %v12_v5 = vld [vmem:[%s259_s0] sm:$0xff]  ;;  %v15_v8 = vld [vmem:[%s259_s0 + $0x18] sm:$0xff] }
   0x4   :  { %159 = vmatprep.subr.bf16.mxu0 %v191_v0  ;;  %178 = vmatprep.subr.bf16.mxu1 %v191_v0  ;;  %v17_v9 = vpack.c.bf16 %v13_v6, %v12_v5  ;;  %v18_v10 = vpack.c.bf16 %v15_v8, %v14_v7  ;;  %v16_v11 = vld [vmem:[%s259_s0 + $0x20] sm:$0xff] }
   0x5   :  { %v19_v12 = vpack.c.bf16 %v16_v11, %v16_v11 }
   0x7   :  { %160 = vmatpush3.bf16.msra.mxu0 %v188_v2  ;;  %182 = vmatpush3.bf16.msra.mxu1 %v188_v2 }
   0x8   :  { %161 = vmatprep.subr.bf16.mxu0 %v191_v0  ;;  %179 = vmatprep.subr.bf16.mxu1 %v191_v0 }
   0xb   :  { %162 = vmatpush3.bf16.msra.mxu0 %v189_v3  ;;  %183 = vmatpush3.bf16.msra.mxu1 %v189_v3 }
   0xc   :  { %163 = vmatprep.subr.bf16.mxu0 %v191_v0  ;;  %180 = vmatprep.subr.bf16.mxu1 %v191_v0 }
   0xf   :  { %164 = vmatpush3.bf16.msra.mxu0 %v190_v4  ;;  %184 = vmatpush3.bf16.msra.mxu1 %v190_v4 }
  0x12   :  { %166 = vmatmul.mubr.msk.bf16.vlgmr.msra.gmra.mxu0 %vm52_vm1, %v17_v9  ;;  %170 = vmatmul.mubr.msk.bf16.vlgmr.msra.gmra.mxu1 %vm52_vm1, %v18_v10 }
  0x13   :  { %173 = vmatprep.mubr.msk.bf16.mxu1 %vm192_vm0, %v191_v0 }
  0x1a   :  { %174 = vmatmul.mubr.msk.bf16.gmra.mxu1 %vm52_vm1, %v19_v12 }
  0xd2   :  { %v96_v13 = vpop.f32.mrf.mxu0  ;;  %v104_v14 = vpop.f32.mrf.mxu1 }
  0xd3   :  { %vm118_vm3 = vcmp.ge.f32.partialorder %v96_v13, 0.0  ;;  %v123_v15 = vmul.f32 0.01, %v96_v13  ;;  %vm120_vm4 = vcmp.ge.f32.partialorder %v104_v14, 0.0  ;;  %v125_v16 = vmul.f32 0.01, %v104_v14 }
  0xd4   :  { %v167_v17 = vpop.f32.mrf.mxu0  ;;  %v171_v18 = vpop.f32.mrf.mxu1 }
  0xd5   :  { %v128_v19 = vsel %vm118_vm3, %v96_v13, %v123_v15  ;;  %v130_v20 = vsel %vm120_vm4, %v104_v14, %v125_v16 }
  0xd6   :  { %134 = vst.msk [vmem:[%s260_s2] sm:$0xff] %vm133_vm2, %v128_v19  ;;  %136 = vst.msk [vmem:[%s260_s2 + $0x10] sm:$0xff] %vm133_vm2, %v130_v20  ;;  %v99_v21 = vpop.f32.mrf.mxu0  ;;  %v107_v22 = vpop.f32.mrf.mxu1 }
  0xd7   :  { %vm119_vm5 = vcmp.ge.f32.partialorder %v99_v21, 0.0  ;;  %v124_v23 = vmul.f32 0.01, %v99_v21  ;;  %vm121_vm6 = vcmp.ge.f32.partialorder %v107_v22, 0.0  ;;  %v126_v24 = vmul.f32 0.01, %v107_v22 }
  0xd8   :  { %v168_v25 = vpop.f32.mrf.mxu0  ;;  %v172_v26 = vpop.f32.mrf.mxu1 }
  0xd9   :  { %v129_v27 = vsel %vm119_vm5, %v99_v21, %v124_v23  ;;  %v131_v28 = vsel %vm121_vm6, %v107_v22, %v126_v24 }
  0xda   :  { %135 = vst.msk [vmem:[%s260_s2 + $0x8] sm:$0xff] %vm133_vm2, %v129_v27  ;;  %137 = vst.msk [vmem:[%s260_s2 + $0x18] sm:$0xff] %vm133_vm2, %v131_v28  ;;  %v112_v29 = vpop.f32.mrf.mxu1 }
  0xdb   :  { %vm122_vm7 = vcmp.ge.f32.partialorder %v112_v29, 0.0  ;;  %v127_v30 = vmul.f32 0.01, %v112_v29 }
  0xdc   :  { %v175_v31 = vpop.f32.mrf.mxu1 }
  0xdd   :  { %v132_v32 = vsel %vm122_vm7, %v112_v29, %v127_v30 }
  0xde   :  { %138 = vst.msk [vmem:[%s260_s2 + $0x20] sm:$0xff] %vm133_vm2, %v132_v32  ;;  %v115_v33 = vpop.f32.mrf.mxu1 }
  0xe0   :  { %v176_v34 = vpop.f32.mrf.mxu1 }

// kernel: _lambda_.48
= control target key start
LH: loop header
LB: loop body
LE: loop exit
PB: predicated region body
PF: predicated region fallthrough
CT: control target
= control target key end

     0   :  { %v108_v0 = vmov 0.0   ;;  %vm109_vm0 = vmmov 0   ;;  %vm31_vm1 = vcmask 261120   ;;  %vm82_vm3 = vcmask 523264   ;;  %s143_s1 = inlined_call_operand.vmem [shape: bf16[32,64], index: 1, kind: input, shape index: {}]   ;;  %s144_s0 = inlined_call_operand.vmem [shape: f32[10,32], index: 0, kind: input, shape index: {}]   ;;  %s145_s2 = inlined_call_operand.vmem [shape: f32[10,64], index: 2, kind: output, shape index: {}]  }
   0x1   :  { %96 = vmatprep.subr.bf16.mxu0 %v108_v0  ;;  %v106_v1 = vld [vmem:[%s143_s1 + $0x8] sm:$0xff]   ;;  %100 = vmatprep.mubr.msk.bf16.mxu0 %vm109_vm0, %v108_v0  ;;  %v107_v2 = vld [vmem:[%s143_s1] sm:$0xff]   ;;  %vm84_vm5 = vcmask 517120  }
   0x2   :  { %97 = vmatpush3.bf16.msra.mxu0 %v106_v1  ;;  %v12_v3 = vld [vmem:[%s144_s0] sm:$0xff]  ;;  %v13_v4 = vld [vmem:[%s144_s0 + $0x8] sm:$0x3] }
   0x3   :  { %98 = vmatprep.subr.bf16.mxu0 %v108_v0  ;;  %v14_v5 = vpack.c.bf16 %v13_v4, %v12_v3 }
   0x6   :  { %99 = vmatpush3.bf16.msra.mxu0 %v107_v2 }
   0x9   :  { %101 = vmatmul.mubr.msk.bf16.vlgmr.msra.gmra.mxu0 %vm31_vm1, %v14_v5 }
  0xc9   :  { %v69_v6 = vpop.f32.mrf.mxu0 }
  0xca   :  { %vm76_vm2 = vcmp.ge.f32.partialorder %v69_v6, 0.0  ;;  %v78_v7 = vmul.f32 0.01, %v69_v6 }
  0xcb   :  { %v102_v8 = vpop.f32.mrf.mxu0 }
  0xcc   :  { %v80_v9 = vsel %vm76_vm2, %v69_v6, %v78_v7 }
  0xcd   :  { %83 = vst.msk [vmem:[%s145_s2] sm:$0xff] %vm82_vm3, %v80_v9  ;;  %v72_v10 = vpop.f32.mrf.mxu0 }
  0xce   :  { %vm77_vm4 = vcmp.ge.f32.partialorder %v72_v10, 0.0  ;;  %v79_v11 = vmul.f32 0.01, %v72_v10 }
  0xcf   :  { %v103_v12 = vpop.f32.mrf.mxu0 }
  0xd0   :  { %v81_v13 = vsel %vm77_vm4, %v72_v10, %v79_v11 }
  0xd1   :  { %85 = vst.msk [vmem:[%s145_s2 + $0x8] sm:$0x3] %vm84_vm5, %v81_v13 }

// kernel: _lambda_.69
= control target key start
LH: loop header
LB: loop body
LE: loop exit
PB: predicated region body
PF: predicated region fallthrough
CT: control target
= control target key end

     0   :  { %vm23_vm0 = vcmask 517120   ;;  %s252_s0 = inlined_call_operand.vmem [shape: bf16[2,64], index: 0, kind: input, shape index: {}]   ;;  %s253_s1 = inlined_call_operand.vmem [shape: f32[1,64], index: 1, kind: input, shape index: {}]   ;;  %s254_s2 = inlined_call_operand.vmem [shape: f32[1,64], index: 2, kind: input, shape index: {}]   ;;  %s255_s3 = inlined_call_operand.vmem [shape: bf16[64,32], index: 3, kind: input, shape index: {}]   ;;  %s256_s4 = inlined_call_operand.hbm [shape: f32[2,32], index: 4, kind: output, shape index: {}]  }
   0x1   :  { %v19_v0 = vld [vmem:[%s252_s0] sm:$0x1] }
   0x2   :  { %v20_v1 = vunpack.c.l.bf16 %v19_v0 }
   0x4   :  { %v24_v2 = vsel %vm23_vm0, %v20_v1, 0.0 }
   0x5   :  { %9 = vsyncpa [#allocation3], 0  ;;  %25 = vadd.xlane.f32.xlu0 %v24_v2  ;;  %v172_v8 = vld [vmem:[%s255_s3 + $0x18] sm:$0xff]   ;;  %v200_v9 = vmov 0.0   ;;  %vm201_vm1 = vmmov 0   ;;  %v173_v10 = vld [vmem:[%s255_s3 + $0x10] sm:$0xff]  }
   0x6   :  { %157 = vmatprep.subr.bf16.mxu0 %v200_v9  ;;  %165 = vmatprep.mubr.msk.bf16.mxu0 %vm201_vm1, %v200_v9  ;;  %v174_v11 = vld [vmem:[%s255_s3 + $0x8] sm:$0xff]   ;;  %v175_v12 = vld [vmem:[%s255_s3] sm:$0xff]   ;;  %vm85_vm2 = vcmask 523264   ;;  %s202_s3 = smov [#allocation2]   ;;  %vm129_vm3 = vcmask 254976  }
   0x7   :  { %158 = vmatpush3.bf16.msra.mxu0 %v172_v8  ;;  %v145_v17 = vld [vmem:[%s253_s1] ss:$0 sm:$0xff]  ;;  %s137_s28 = sshll.u32 %s202_s3, 4  ;;  %s138_s28 = int_to_ptr.vmem [resolvable:$true] %s137_s28 }
   0x8   :  { %159 = vmatprep.subr.bf16.mxu0 %v200_v9  ;;  %v146_v19 = vld [vmem:[%s254_s2] ss:$0 sm:$0xff]  ;;  %s178_s29 = scalar_lea.vmem %s138_s28, 32  ;;  %p183_p1 = scmp.lt.s32.totalorder %s138_s28, %s138_s28 }
   0x9   :  { %p179_p0 = scmp.ne.s32.totalorder %s138_s28, %s178_s29  ;;  %p184_p2 = scmp.lt.s32.totalorder %s178_s29, %s178_s29 }
   0xb   :  { %160 = vmatpush3.bf16.msra.mxu0 %v173_v10  ;;  %p185_p3 = por %p184_p2, %p183_p1 }
   0xc   :  { %161 = vmatprep.subr.bf16.mxu0 %v200_v9 }
   0xd   :  { %p186_p4 = pnand %p185_p3, %p179_p0 }
   0xf   :  { %162 = vmatpush3.bf16.msra.mxu0 %v174_v11 }
  0x10   :  { %163 = vmatprep.subr.bf16.mxu0 %v200_v9 }
  0x13   :  { %164 = vmatpush3.bf16.msra.mxu0 %v175_v12 }
  0x8e   :  { %v26_v3 = vpop.xlane.xlu0 %25 }
  0x8f   :  { %v28_v4 = vmul.f32 0.015625, %v26_v3 }
  0x91   :  { %v29_v5 = vsub.f32 %v20_v1, %v28_v4 }
  0x93   :  { %v30_v6 = vmul.f32 %v29_v5, %v29_v5 }
  0x95   :  { %v31_v7 = vsel %vm23_vm0, %v30_v6, 0.0 }
  0x96   :  { %32 = vadd.xlane.f32.xlu0 %v31_v7 }
 0x11f   :  { %v33_v13 = vpop.xlane.xlu0 %32 }
 0x120   :  { %v34_v14 = vmul.f32 0.015625, %v33_v13 }
 0x122   :  { %v35_v15 = vadd.f32 1e-05, %v34_v14 }
 0x124   :  { %176 = vrsqrt.f32 %v35_v15 }
 0x131   :  { %v177_v16 = vpop.eup %176 }
 0x132   :  { %v37_v18 = vmul.f32 %v177_v16, %v29_v5 }
 0x134   :  { %v44_v20 = vmul.f32 %v145_v17, %v37_v18 }
 0x136   :  { %v51_v21 = vadd.f32 %v146_v19, %v44_v20 }
 0x138   :  { %v52_v22 = vpack.c.bf16 %v51_v21, %v51_v21 }
 0x13a   :  { %166 = vmatmul.mubr.msk.bf16.vlgmr.msra.gmra.mxu0 %vm85_vm2, %v52_v22 }
 0x1fa   :  { %v123_v23 = vpop.f32.mrf.mxu0 }
 0x1fb   :  { %130 = vst.msk [vmem:[#allocation2] sm:$0x3] %vm129_vm3, %v123_v23 }
 0x1fc   :  { %v167_v24 = vpop.f32.mrf.mxu0 }
 0x1fd   :  { %189 = shalt.err (!%p186_p4)
}
 0x1fe   :  { %140 = dma.vmem_to_hbm [thread:$0]  %s138_s28, 32, %s256_s4, [#allocation3]   ;;  %v126_v25 = vpop.f32.mrf.mxu0 }
 0x200   :  { %v168_v26 = vpop.f32.mrf.mxu0 }
 0x201   :  { %198 = dma.done.wait [#allocation3], 32  }
 0x202   :  { %199 = vsyncadd [#allocation3], 4294967264 }
 0x203   :  { %144 = vsyncpa [#allocation3], 1 }

</bundles_post_ra>
